<compile_context>
chip_gen: v5e
topology: v5e:2x2
jax: 0.10.0
libtpu: 0.0.40
codegen_flags: <defaults>
</compile_context>

<pallas_src>
import functools
import math

import jax
import jax.numpy as jnp
from jax.experimental import pallas as pl
from jax.experimental.pallas import tpu as pltpu

LN_EPS = 1e-6   # timm.layers.LayerNorm default eps


def _vmem_limit_bytes():
    # Leave ~25% headroom for compiler scratch / semaphores / double buffers.
    try:
        cap = int(getattr(pltpu.get_tpu_info(), "vmem_capacity_bytes", 0))
    except Exception:
        cap = 0
    if cap <= 0:
        cap = 64 * 1024 * 1024
    return min((cap * 3) // 4, 100 * 1024 * 1024)


VMEM_LIMIT = _vmem_limit_bytes()


def _round_up(x, m):
    return (x + m - 1) // m * m


# ----------------------------- in-kernel helpers -----------------------------
def _layer_norm(x, gamma, beta, eps=LN_EPS):
    mu = jnp.mean(x, axis=-1, keepdims=True)
    var = jnp.mean(jnp.square(x - mu), axis=-1, keepdims=True)
    return (x - mu) * jax.lax.rsqrt(var + eps) * gamma + beta


def _gelu_tanh(x):
    # TODO(synk): tanh-approx GELU (EUP tanh) instead of exact-erf nn.GELU;
    # ~1e-3 max abs deviation vs the PyTorch reference.
    c = 0.7978845608028654  # sqrt(2/pi)
    return 0.5 * x * (1.0 + jnp.tanh(c * (x + 0.044715 * x * x * x)))


# ----------------------------- patch-embed kernel -----------------------------
def _matmul_bias_kernel(x_ref, w_ref, b_ref, o_ref):
    o_ref[...] = (
        jnp.dot(x_ref[...], w_ref[...], preferred_element_type=jnp.float32)
        + b_ref[...])


def matmul_bias(x, w, b, tm=512):
    """x: (M,K) bf16, w: (K,N) bf16, b: (N,) f32 -> (M,N) f32. Tiled over M."""
    M, K = x.shape
    N = w.shape[1]
    tm = M if M <= tm else tm
    return pl.pallas_call(
        _matmul_bias_kernel,
        out_shape=jax.ShapeDtypeStruct((M, N), jnp.float32),
        grid=(pl.cdiv(M, tm),),
        in_specs=[
            pl.BlockSpec((tm, K), lambda i: (i, 0)),
            pl.BlockSpec((K, N), lambda i: (0, 0)),
            pl.BlockSpec((1, N), lambda i: (0, 0)),
        ],
        out_specs=pl.BlockSpec((tm, N), lambda i: (i, 0)),
        compiler_params=pltpu.CompilerParams(
            dimension_semantics=("parallel",),
            vmem_limit_bytes=VMEM_LIMIT),
    )(x, w, b.reshape(1, -1))


# --------------------- fused depth-of-blocks (+ pooling) kernel ---------------------
def _eva_depth_kernel(x_ref, ln1_g_ref, ln1_b_ref, wqkv_ref, bqkv_ref,
                      wproj_ref, bproj_ref, ln2_g_ref, ln2_b_ref,
                      w1_ref, b1_ref, w2_ref, b2_ref,
                      pooled_ref, res_ref, *, num_heads, n_valid, num_prefix):
    layer = pl.program_id(1)
    n_layers = pl.num_programs(1)

    @pl.when(layer == 0)
    def _():
        res_ref[...] = x_ref[0]           # seed residual stream (VMEM-resident)

    x = res_ref[...]                      # (N, C) f32 residual
    n_tok, dim = x.shape
    nh = num_heads
    d = dim // nh

    # ---------------- attention branch (pre-norm) ----------------
    xn = _layer_norm(x, ln1_g_ref[0], ln1_b_ref[0]).astype(jnp.bfloat16)
    # One full-width (N,C)x(C,3C) bf16 matmul; 1/sqrt(head_dim) already folded
    # into the q columns of wqkv/bqkv in prepare_eva_params.
    qkv = jnp.dot(xn, wqkv_ref[0], preferred_element_type=jnp.float32) + bqkv_ref[0]
    qkv = jnp.transpose(qkv.reshape(n_tok, 3 * nh, d), (1, 0, 2))   # (3H, N, d)
    q = qkv[:nh].astype(jnp.bfloat16)
    k = qkv[nh:2 * nh].astype(jnp.bfloat16)
    v = qkv[2 * nh:].astype(jnp.bfloat16)

    s = jnp.einsum('hnd,hmd->hnm', q, k,
                   preferred_element_type=jnp.float32)              # (H, N, N)
    if n_valid < n_tok:                   # mask padded key columns
        key_idx = jax.lax.broadcasted_iota(jnp.int32, (1, 1, n_tok), 2)
        s = jnp.where(key_idx < n_valid, s, -1e30)
    s = s - jnp.max(s, axis=-1, keepdims=True)
    p = jnp.exp(s)
    p = p * pl.reciprocal(jnp.sum(p, axis=-1, keepdims=True), approx=True)
    o = jnp.einsum('hnm,hmd->hnd', p.astype(jnp.bfloat16), v,
                   preferred_element_type=jnp.float32)              # (H, N, d)
    o = jnp.transpose(o, (1, 0, 2)).reshape(n_tok, dim).astype(jnp.bfloat16)
    x = x + (jnp.dot(o, wproj_ref[0], preferred_element_type=jnp.float32)
             + bproj_ref[0])

    # ---------------- MLP branch (pre-norm) ----------------
    xn2 = _layer_norm(x, ln2_g_ref[0], ln2_b_ref[0]).astype(jnp.bfloat16)
    h1 = jnp.dot(xn2, w1_ref[0], preferred_element_type=jnp.float32) + b1_ref[0]
    h1 = _gelu_tanh(h1).astype(jnp.bfloat16)
    x = x + jnp.dot(h1, w2_ref[0], preferred_element_type=jnp.float32) + b2_ref[0]
    res_ref[...] = x

    # ---------- last layer: global avg pool over patch tokens (masked, aligned) ----------
    @pl.when(layer == n_layers - 1)
    def _():
        row = jax.lax.broadcasted_iota(jnp.int32, (n_tok, 1), 0)
        m = jnp.logical_and(row >= num_prefix, row < n_valid).astype(jnp.float32)
        pooled_ref[0] = (jnp.sum(x * m, axis=0, keepdims=True)
                         / float(n_valid - num_prefix))


def eva_blocks_pool(z, blk, *, num_heads, n_valid, num_prefix):
    """z: (B, N_pad, C) f32 tokens -> (B, 1, C) f32 pooled features.
    grid = (batch, depth); residual stream stays resident in a VMEM scratch
    across the depth axis while stacked per-layer weights stream in."""
    B, n_pad, C = z.shape
    depth = blk["wqkv"].shape[0]

    def wspec(shape):
        nd = len(shape)
        return pl.BlockSpec((1,) + tuple(shape[1:]),
                            lambda b, l, _nd=nd: (l,) + (0,) * (_nd - 1))

    kernel = functools.partial(_eva_depth_kernel, num_heads=num_heads,
                               n_valid=n_valid, num_prefix=num_prefix)
    # TODO(synk): for very long sequences (EVA-base N=577+) on v7x, add a
    # flash-style query-tile grid axis to bound the (H,N,N) score live-set.
    return pl.pallas_call(
        kernel,
        out_shape=jax.ShapeDtypeStruct((B, 1, C), jnp.float32),
        grid=(B, depth),
        in_specs=[
            pl.BlockSpec((1, n_pad, C), lambda b, l: (b, 0, 0)),   # tokens
            wspec(blk["ln1_g"].shape), wspec(blk["ln1_b"].shape),
            wspec(blk["wqkv"].shape), wspec(blk["bqkv"].shape),
            wspec(blk["wproj"].shape), wspec(blk["bproj"].shape),
            wspec(blk["ln2_g"].shape), wspec(blk["ln2_b"].shape),
            wspec(blk["w1"].shape), wspec(blk["b1"].shape),
            wspec(blk["w2"].shape), wspec(blk["b2"].shape),
        ],
        out_specs=pl.BlockSpec((1, 1, C), lambda b, l: (b, 0, 0)),
        scratch_shapes=[pltpu.VMEM((n_pad, C), jnp.float32)],
        compiler_params=pltpu.CompilerParams(
            dimension_semantics=("parallel", "arbitrary"),
            vmem_limit_bytes=VMEM_LIMIT),
    )(z, blk["ln1_g"], blk["ln1_b"], blk["wqkv"], blk["bqkv"],
      blk["wproj"], blk["bproj"], blk["ln2_g"], blk["ln2_b"],
      blk["w1"], blk["b1"], blk["w2"], blk["b2"])


# --------------------------------- head kernel ---------------------------------
def _head_kernel(p_ref, g_ref, b_ref, w_ref, hb_ref, o_ref):
    xn = _layer_norm(p_ref[...], g_ref[...], b_ref[...])       # fc_norm
    o_ref[...] = (jnp.dot(xn.astype(jnp.bfloat16), w_ref[...],
                          preferred_element_type=jnp.float32) + hb_ref[...])


def eva_head(pooled, kp):
    """pooled: (B, C) f32 -> (B, num_classes_padded) f32, one batched matmul."""
    B, _ = pooled.shape
    ncp = kp["head_w"].shape[1]
    return pl.pallas_call(
        _head_kernel,
        out_shape=jax.ShapeDtypeStruct((B, ncp), jnp.float32),
        compiler_params=pltpu.CompilerParams(vmem_limit_bytes=VMEM_LIMIT),
    )(pooled, kp["fc_norm_g"], kp["fc_norm_b"], kp["head_w"], kp["head_b"])


# ----------------------------- parameters / forward -----------------------------
def trunc_normal(key, shape, std=0.02):
    return std * jax.random.truncated_normal(key, -2.0, 2.0, shape, jnp.float32)


def init_eva_params(key, *, in_chans, patch, embed_dim, depth, num_heads,
                    mlp_ratio, num_classes, num_patches, head_init_scale=1e-3):
    del num_heads
    hidden = int(embed_dim * mlp_ratio)
    keys = jax.random.split(key, depth + 8)
    kit = iter(keys)
    params = {
        "patch_w": trunc_normal(next(kit), (embed_dim, in_chans, patch, patch)),
        "patch_b": jnp.zeros((embed_dim,), jnp.float32),
        "cls_token": trunc_normal(next(kit), (1, 1, embed_dim)),
        "pos_embed": trunc_normal(next(kit), (1, num_patches + 1, embed_dim)),
        "fc_norm_g": jnp.ones((embed_dim,), jnp.float32),
        "fc_norm_b": jnp.zeros((embed_dim,), jnp.float32),
        "head_w": trunc_normal(next(kit), (embed_dim, num_classes)) * head_init_scale,
        "head_b": jnp.zeros((num_classes,), jnp.float32),
    }
    blocks = []
    for i in range(depth):
        bk = jax.random.split(next(kit), 4)
        rescale = 1.0 / math.sqrt(2.0 * (i + 1))   # Eva.fix_init_weight
        blocks.append(dict(
            ln1_g=jnp.ones((embed_dim,), jnp.float32),
            ln1_b=jnp.zeros((embed_dim,), jnp.float32),
            wqkv=trunc_normal(bk[0], (embed_dim, 3 * embed_dim)),
            bqkv=jnp.zeros((3 * embed_dim,), jnp.float32),
            wproj=trunc_normal(bk[1], (embed_dim, embed_dim)) * rescale,
            bproj=jnp.zeros((embed_dim,), jnp.float32),
            ln2_g=jnp.ones((embed_dim,), jnp.float32),
            ln2_b=jnp.zeros((embed_dim,), jnp.float32),
            w1=trunc_normal(bk[2], (embed_dim, hidden)),
            b1=jnp.zeros((hidden,), jnp.float32),
            w2=trunc_normal(bk[3], (hidden, embed_dim)) * rescale,
            b2=jnp.zeros((embed_dim,), jnp.float32),
        ))
    params["blocks"] = blocks
    return params


def prepare_eva_params(params, num_heads):
    """Convert 'torch-like' f32 params to the kernel layout: per-layer weights
    stacked along a leading depth dim, bf16 matmul weights, attention scale
    folded into the q columns of the fused qkv, LN params / biases as (1,-1)
    f32, classifier padded to a lane-dense number of classes.
    NOTE: assumes the fused qkv weight is laid out (C, [q|k|v]*C); timm's
    nn.Linear stores (3C, C) — transpose when importing real weights."""
    D = params["patch_w"].shape[0]
    nc = params["head_w"].shape[1]
    nc_pad = _round_up(nc, 128)
    kp = {
        "patch_w": params["patch_w"].reshape(D, -1).T.astype(jnp.bfloat16),  # (K, D)
        "patch_b": params["patch_b"],
        "cls_token": params["cls_token"],
        "pos_embed": params["pos_embed"],
        "fc_norm_g": params["fc_norm_g"].reshape(1, -1),
        "fc_norm_b": params["fc_norm_b"].reshape(1, -1),
        "head_w": jnp.pad(params["head_w"],
                          ((0, 0), (0, nc_pad - nc))).astype(jnp.bfloat16),
        "head_b": jnp.pad(params["head_b"], (0, nc_pad - nc)).reshape(1, -1),
    }
    blocks = params["blocks"]
    C = blocks[0]["ln1_g"].shape[0]
    d = C // num_heads
    scale = d ** -0.5

    def stack(fn):
        return jnp.stack([fn(b) for b in blocks], axis=0)

    kp["blk"] = dict(
        ln1_g=stack(lambda b: b["ln1_g"].reshape(1, -1)),
        ln1_b=stack(lambda b: b["ln1_b"].reshape(1, -1)),
        wqkv=stack(lambda b: jnp.concatenate(
            [b["wqkv"][:, :C] * scale, b["wqkv"][:, C:]], axis=1
        ).astype(jnp.bfloat16)),
        bqkv=stack(lambda b: jnp.concatenate(
            [b["bqkv"][:C] * scale, b["bqkv"][C:]]).reshape(1, -1)),
        wproj=stack(lambda b: b["wproj"].astype(jnp.bfloat16)),
        bproj=stack(lambda b: b["bproj"].reshape(1, -1)),
        ln2_g=stack(lambda b: b["ln2_g"].reshape(1, -1)),
        ln2_b=stack(lambda b: b["ln2_b"].reshape(1, -1)),
        w1=stack(lambda b: b["w1"].astype(jnp.bfloat16)),
        b1=stack(lambda b: b["b1"].reshape(1, -1)),
        w2=stack(lambda b: b["w2"].astype(jnp.bfloat16)),
        b2=stack(lambda b: b["b2"].reshape(1, -1)),
    )
    return kp


def patchify(x, patch):
    """NCHW -> (B, num_patches, C_in*patch*patch), flatten order (C, ph, pw)
    to match Conv2d(stride=patch) + flatten(2).transpose(1, 2) in PatchEmbed."""
    B, Cin, H, W = x.shape
    Hp, Wp = H // patch, W // patch
    x = x.reshape(B, Cin, Hp, patch, Wp, patch)
    x = x.transpose(0, 2, 4, 1, 3, 5)
    return x.reshape(B, Hp * Wp, Cin * patch * patch)


def eva_forward(x, kp, *, patch, num_heads, num_classes):
    B = x.shape[0]
    C = kp["pos_embed"].shape[-1]
    patches = patchify(x, patch)                      # (B, Np, K)  -- glue
    Np, K = patches.shape[1], patches.shape[2]
    z = matmul_bias(patches.reshape(B * Np, K).astype(jnp.bfloat16),
                    kp["patch_w"], kp["patch_b"])
    z = z.reshape(B, Np, C)
    cls = jnp.broadcast_to(kp["cls_token"], (B, 1, C))
    z = jnp.concatenate([cls, z], axis=1) + kp["pos_embed"]   # cls + abs pos (glue)
    # TODO(synk): rope / PatchDropout / DropPath / dropout are disabled in the
    # default Eva config (rates 0, use_rot_pos_emb=False) and therefore omitted.
    n_tok = Np + 1
    n_pad = _round_up(n_tok, 8) if n_tok < 128 else _round_up(n_tok, 128)
    if n_pad > n_tok:
        z = jnp.pad(z, ((0, 0), (0, n_pad - n_tok), (0, 0)))
    pooled = eva_blocks_pool(z, kp["blk"], num_heads=num_heads,
                             n_valid=n_tok, num_prefix=1)      # (B, 1, C)
    logits = eva_head(pooled.reshape(B, C), kp)                # (B, nc_pad)
    return logits[:, :num_classes]


if __name__ == "__main__":
    key = jax.random.PRNGKey(0)
    kx, kparam = jax.random.split(key)

    # small EVA: 16x16 image, 4x4 patches -> 16 patches + 1 cls = 17 tokens
    B, Cin, HW, patch = 2, 3, 16, 4
    embed_dim, depth, num_heads, mlp_ratio, num_classes = 64, 2, 2, 4.0, 10
    Np = (HW // patch) ** 2

    x = jax.random.normal(kx, (B, Cin, HW, HW), jnp.float32)
    params = init_eva_params(
        kparam, in_chans=Cin, patch=patch, embed_dim=embed_dim, depth=depth,
        num_heads=num_heads, mlp_ratio=mlp_ratio, num_classes=num_classes,
        num_patches=Np)
    kp = prepare_eva_params(params, num_heads)        # bf16 / stacked layout

    fwd = jax.jit(functools.partial(eva_forward, patch=patch,
                                    num_heads=num_heads,
                                    num_classes=num_classes))
    logits = fwd(x, kp)
    jax.block_until_ready(logits)
    assert logits.shape == (B, num_classes)
    assert bool(jnp.all(jnp.isfinite(logits)))
    print("KERNEL_OK")
</pallas_src>

<mosaic_0001>
module attributes {stable_mosaic.version = 11 : i64} {
  func.func @_matmul_bias_kernel(%arg0: i32, %arg1: memref<32x48xbf16, #tpu.memory_space<vmem>>, %arg2: memref<48x64xbf16, #tpu.memory_space<vmem>>, %arg3: memref<1x64xf32, #tpu.memory_space<vmem>>, %arg4: memref<32x64xf32, #tpu.memory_space<vmem>>) attributes {dimension_semantics = [#tpu.dimension_semantics<parallel>], iteration_bounds = array<i64: 1>, scalar_prefetch = 0 : i64, scratch_operands = 0 : i64, tpu.core_type = #tpu.core_type<tc>, window_params = [{transform_indices = @transform_0, window_bounds = array<i64: 32, 48>}, {pipeline_mode = #tpu.pipeline_mode<synchronous>, transform_indices = @transform_1, window_bounds = array<i64: 48, 64>}, {pipeline_mode = #tpu.pipeline_mode<synchronous>, transform_indices = @transform_2, window_bounds = array<i64: 1, 64>}, {transform_indices = @transform_3, window_bounds = array<i64: 32, 64>}]} {
    %c0 = arith.constant 0 : index
    %c0_0 = arith.constant 0 : index
    %0 = vector.load %arg1[%c0, %c0_0] : memref<32x48xbf16, #tpu.memory_space<vmem>>, vector<32x48xbf16>
    %c0_1 = arith.constant 0 : index
    %c0_2 = arith.constant 0 : index
    %1 = vector.load %arg2[%c0_1, %c0_2] : memref<48x64xbf16, #tpu.memory_space<vmem>>, vector<48x64xbf16>
    %cst = arith.constant dense<0.000000e+00> : vector<32x64xf32>
    %2 = tpu.matmul %0, %1, %cst {dimension_numbers = #tpu.dot_dimension_numbers<[1], [0], [0], [1], [0, 0, 1, 1], [], []>} : vector<32x48xbf16>, vector<48x64xbf16>, vector<32x64xf32> -> vector<32x64xf32>
    %c0_3 = arith.constant 0 : index
    %c0_4 = arith.constant 0 : index
    %3 = vector.load %arg3[%c0_3, %c0_4] : memref<1x64xf32, #tpu.memory_space<vmem>>, vector<1x64xf32>
    %4 = vector.broadcast %3 : vector<1x64xf32> to vector<32x64xf32>
    %5 = arith.addf %2, %4 : vector<32x64xf32>
    %c0_5 = arith.constant 0 : index
    %c0_6 = arith.constant 0 : index
    %6 = vector.load %arg4[%c0_5, %c0_6] : memref<32x64xf32, #tpu.memory_space<vmem>>, vector<32x64xf32>
    tpu.vector_store %arg4[%c0_5, %c0_6], %5 {strides = array<i32>} : memref<32x64xf32, #tpu.memory_space<vmem>>, vector<32x64xf32>,
    return
  }
  func.func @transform_0(%arg0: i32) -> (i32, i32) {
    %c0_i32 = arith.constant 0 : i32
    %c0_i32_0 = arith.constant 0 : i32
    return %arg0, %c0_i32 : i32, i32
  }
  func.func @transform_1(%arg0: i32) -> (i32, i32) {
    %c0_i32 = arith.constant 0 : i32
    %c0_i32_0 = arith.constant 0 : i32
    %c0_i32_1 = arith.constant 0 : i32
    return %c0_i32, %c0_i32_0 : i32, i32
  }
  func.func @transform_2(%arg0: i32) -> (i32, i32) {
    %c0_i32 = arith.constant 0 : i32
    %c0_i32_0 = arith.constant 0 : i32
    %c0_i32_1 = arith.constant 0 : i32
    return %c0_i32, %c0_i32_0 : i32, i32
  }
  func.func @transform_3(%arg0: i32) -> (i32, i32) {
    %c0_i32 = arith.constant 0 : i32
    %c0_i32_0 = arith.constant 0 : i32
    return %arg0, %c0_i32 : i32, i32
  }
}

module attributes {stable_mosaic.version = 11 : i64} {
  func.func @_eva_depth_kernel(%arg0: i32, %arg1: i32, %arg2: memref<1x24x64xf32, #tpu.memory_space<vmem>>, %arg3: memref<1x1x64xf32, #tpu.memory_space<vmem>>, %arg4: memref<1x1x64xf32, #tpu.memory_space<vmem>>, %arg5: memref<1x64x192xbf16, #tpu.memory_space<vmem>>, %arg6: memref<1x1x192xf32, #tpu.memory_space<vmem>>, %arg7: memref<1x64x64xbf16, #tpu.memory_space<vmem>>, %arg8: memref<1x1x64xf32, #tpu.memory_space<vmem>>, %arg9: memref<1x1x64xf32, #tpu.memory_space<vmem>>, %arg10: memref<1x1x64xf32, #tpu.memory_space<vmem>>, %arg11: memref<1x64x256xbf16, #tpu.memory_space<vmem>>, %arg12: memref<1x1x256xf32, #tpu.memory_space<vmem>>, %arg13: memref<1x256x64xbf16, #tpu.memory_space<vmem>>, %arg14: memref<1x1x64xf32, #tpu.memory_space<vmem>>, %arg15: memref<1x1x64xf32, #tpu.memory_space<vmem>>, %arg16: memref<24x64xf32, #tpu.memory_space<vmem>>) attributes {dimension_semantics = [#tpu.dimension_semantics<parallel>, #tpu.dimension_semantics<arbitrary>], iteration_bounds = array<i64: 2, 2>, scalar_prefetch = 0 : i64, scratch_operands = 1 : i64, tpu.core_type = #tpu.core_type<tc>, window_params = [{transform_indices = @transform_0, window_bounds = array<i64: 1, 24, 64>}, {transform_indices = @transform_1, window_bounds = array<i64: 1, 1, 64>}, {transform_indices = @transform_2, window_bounds = array<i64: 1, 1, 64>}, {transform_indices = @transform_3, window_bounds = array<i64: 1, 64, 192>}, {transform_indices = @transform_4, window_bounds = array<i64: 1, 1, 192>}, {transform_indices = @transform_5, window_bounds = array<i64: 1, 64, 64>}, {transform_indices = @transform_6, window_bounds = array<i64: 1, 1, 64>}, {transform_indices = @transform_7, window_bounds = array<i64: 1, 1, 64>}, {transform_indices = @transform_8, window_bounds = array<i64: 1, 1, 64>}, {transform_indices = @transform_9, window_bounds = array<i64: 1, 64, 256>}, {transform_indices = @transform_10, window_bounds = array<i64: 1, 1, 256>}, {transform_indices = @transform_11, window_bounds = array<i64: 1, 256, 64>}, {transform_indices = @transform_12, window_bounds = array<i64: 1, 1, 64>}, {transform_indices = @transform_13, window_bounds = array<i64: 1, 1, 64>}]} {
    %c0_i32 = arith.constant 0 : i32
    %0 = arith.cmpi eq, %arg1, %c0_i32 : i32
    %1 = arith.extui %0 : i1 to i32
    %c0_i32_0 = arith.constant 0 : i32
    %2 = arith.cmpi ne, %1, %c0_i32_0 : i32
    scf.if %2 {
      %c0_63 = arith.constant 0 : index
      %c0_64 = arith.constant 0 : index
      %c0_65 = arith.constant 0 : index
      %137 = vector.load %arg2[%c0_63, %c0_64, %c0_65] : memref<1x24x64xf32, #tpu.memory_space<vmem>>, vector<1x24x64xf32>
      %138 = vector.shape_cast %137 : vector<1x24x64xf32> to vector<24x64xf32>
      %c0_66 = arith.constant 0 : index
      %c0_67 = arith.constant 0 : index
      %139 = vector.load %arg16[%c0_66, %c0_67] : memref<24x64xf32, #tpu.memory_space<vmem>>, vector<24x64xf32>
      tpu.vector_store %arg16[%c0_66, %c0_67], %138 {strides = array<i32>} : memref<24x64xf32, #tpu.memory_space<vmem>>, vector<24x64xf32>,
    } else {
    }
    %c0 = arith.constant 0 : index
    %c0_1 = arith.constant 0 : index
    %3 = vector.load %arg16[%c0, %c0_1] : memref<24x64xf32, #tpu.memory_space<vmem>>, vector<24x64xf32>
    %c0_2 = arith.constant 0 : index
    %c0_3 = arith.constant 0 : index
    %c0_4 = arith.constant 0 : index
    %4 = vector.load %arg3[%c0_2, %c0_3, %c0_4] : memref<1x1x64xf32, #tpu.memory_space<vmem>>, vector<1x1x64xf32>
    %5 = vector.shape_cast %4 : vector<1x1x64xf32> to vector<1x64xf32>
    %c0_5 = arith.constant 0 : index
    %c0_6 = arith.constant 0 : index
    %c0_7 = arith.constant 0 : index
    %6 = vector.load %arg4[%c0_5, %c0_6, %c0_7] : memref<1x1x64xf32, #tpu.memory_space<vmem>>, vector<1x1x64xf32>
    %7 = vector.shape_cast %6 : vector<1x1x64xf32> to vector<1x64xf32>
    %cst = arith.constant dense<0.000000e+00> : vector<24xf32>
    %8 = vector.multi_reduction <add>, %3, %cst [1] : vector<24x64xf32> to vector<24xf32>
    %9 = vector.shape_cast %8 : vector<24xf32> to vector<24x1xf32>
    %cst_8 = arith.constant 6.400000e+01 : f32
    %10 = vector.broadcast %cst_8 : f32 to vector<24x1xf32>
    %11 = arith.divf %9, %10 : vector<24x1xf32>
    %12 = vector.broadcast %11 : vector<24x1xf32> to vector<24x64xf32>
    %13 = arith.subf %3, %12 : vector<24x64xf32>
    %14 = arith.mulf %13, %13 : vector<24x64xf32>
    %cst_9 = arith.constant dense<0.000000e+00> : vector<24xf32>
    %15 = vector.multi_reduction <add>, %14, %cst_9 [1] : vector<24x64xf32> to vector<24xf32>
    %16 = vector.shape_cast %15 : vector<24xf32> to vector<24x1xf32>
    %cst_10 = arith.constant 6.400000e+01 : f32
    %17 = vector.broadcast %cst_10 : f32 to vector<24x1xf32>
    %18 = arith.divf %16, %17 : vector<24x1xf32>
    %19 = vector.broadcast %11 : vector<24x1xf32> to vector<24x64xf32>
    %20 = arith.subf %3, %19 : vector<24x64xf32>
    %cst_11 = arith.constant 9.99999997E-7 : f32
    %21 = vector.broadcast %cst_11 : f32 to vector<24x1xf32>
    %22 = arith.addf %18, %21 : vector<24x1xf32>
    %23 = math.rsqrt %22 : vector<24x1xf32>
    %24 = vector.broadcast %23 : vector<24x1xf32> to vector<24x64xf32>
    %25 = arith.mulf %20, %24 : vector<24x64xf32>
    %26 = vector.broadcast %5 : vector<1x64xf32> to vector<24x64xf32>
    %27 = arith.mulf %25, %26 : vector<24x64xf32>
    %28 = vector.broadcast %7 : vector<1x64xf32> to vector<24x64xf32>
    %29 = arith.addf %27, %28 : vector<24x64xf32>
    %30 = arith.truncf %29 : vector<24x64xf32> to vector<24x64xbf16>
    %c0_12 = arith.constant 0 : index
    %c0_13 = arith.constant 0 : index
    %c0_14 = arith.constant 0 : index
    %31 = vector.load %arg5[%c0_12, %c0_13, %c0_14] : memref<1x64x192xbf16, #tpu.memory_space<vmem>>, vector<1x64x192xbf16>
    %32 = vector.shape_cast %31 : vector<1x64x192xbf16> to vector<64x192xbf16>
    %cst_15 = arith.constant dense<0.000000e+00> : vector<24x192xf32>
    %33 = tpu.matmul %30, %32, %cst_15 {dimension_numbers = #tpu.dot_dimension_numbers<[1], [0], [0], [1], [0, 0, 1, 1], [], []>} : vector<24x64xbf16>, vector<64x192xbf16>, vector<24x192xf32> -> vector<24x192xf32>
    %c0_16 = arith.constant 0 : index
    %c0_17 = arith.constant 0 : index
    %c0_18 = arith.constant 0 : index
    %34 = vector.load %arg6[%c0_16, %c0_17, %c0_18] : memref<1x1x192xf32, #tpu.memory_space<vmem>>, vector<1x1x192xf32>
    %35 = vector.shape_cast %34 : vector<1x1x192xf32> to vector<1x192xf32>
    %36 = vector.broadcast %35 : vector<1x192xf32> to vector<24x192xf32>
    %37 = arith.addf %33, %36 : vector<24x192xf32>
    %38 = vector.shape_cast %37 : vector<24x192xf32> to vector<24x6x32xf32>
    %39 = tpu.transpose %38, [1, 0, 2] : vector<24x6x32xf32> -> vector<6x24x32xf32>
    %40 = vector.extract_strided_slice %39 {offsets = [0, 0, 0], sizes = [2, 24, 32], strides = [1, 1, 1]} : vector<6x24x32xf32> to vector<2x24x32xf32>
    %41 = arith.truncf %40 : vector<2x24x32xf32> to vector<2x24x32xbf16>
    %42 = vector.extract_strided_slice %39 {offsets = [2, 0, 0], sizes = [2, 24, 32], strides = [1, 1, 1]} : vector<6x24x32xf32> to vector<2x24x32xf32>
    %43 = arith.truncf %42 : vector<2x24x32xf32> to vector<2x24x32xbf16>
    %44 = vector.extract_strided_slice %39 {offsets = [4, 0, 0], sizes = [2, 24, 32], strides = [1, 1, 1]} : vector<6x24x32xf32> to vector<2x24x32xf32>
    %45 = arith.truncf %44 : vector<2x24x32xf32> to vector<2x24x32xbf16>
    "tpu.trace_start"() <{level = 10 : i32, message = "hnd,hmd->hnm"}> : () -> ()
    %cst_19 = arith.constant dense<0.000000e+00> : vector<2x24x24xf32>
    %46 = tpu.matmul %41, %43, %cst_19 {dimension_numbers = #tpu.dot_dimension_numbers<[2], [2], [1], [1], [0, 0, 0, 1, 1, 1], [0], [0]>} : vector<2x24x32xbf16>, vector<2x24x32xbf16>, vector<2x24x24xf32> -> vector<2x24x24xf32>
    "tpu.trace_stop"() : () -> ()
    %47 = tpu.iota {dimensions = array<i32: 2>} : vector<1x1x24xi32>
    %c17_i32 = arith.constant 17 : i32
    %48 = vector.broadcast %c17_i32 : i32 to vector<1x1x24xi32>
    %49 = arith.cmpi slt, %47, %48 : vector<1x1x24xi32>
    %cst_20 = arith.constant -1.000000e+30 : f32
    %50 = vector.shape_cast %49 : vector<1x1x24xi1> to vector<1x1x24xi1>
    %51 = vector.broadcast %50 : vector<1x1x24xi1> to vector<2x24x24xi1>
    %52 = vector.broadcast %cst_20 : f32 to vector<2x24x24xf32>
    %53 = arith.select %51, %46, %52 : vector<2x24x24xi1>, vector<2x24x24xf32>
    %cst_21 = arith.constant dense<0xFF800000> : vector<2x24xf32>
    %54 = vector.multi_reduction <maximumf>, %53, %cst_21 [2] : vector<2x24x24xf32> to vector<2x24xf32>
    %55 = vector.shape_cast %54 : vector<2x24xf32> to vector<2x24x1xf32>
    %56 = vector.broadcast %55 : vector<2x24x1xf32> to vector<2x24x24xf32>
    %57 = arith.subf %53, %56 : vector<2x24x24xf32>
    %58 = math.exp %57 : vector<2x24x24xf32>
    %cst_22 = arith.constant dense<0.000000e+00> : vector<2x24xf32>
    %59 = vector.multi_reduction <add>, %58, %cst_22 [2] : vector<2x24x24xf32> to vector<2x24xf32>
    %60 = vector.shape_cast %59 : vector<2x24xf32> to vector<2x24x1xf32>
    %61 = tpu.reciprocal %60 {approx = true} : vector<2x24x1xf32> -> vector<2x24x1xf32>
    %62 = vector.broadcast %61 : vector<2x24x1xf32> to vector<2x24x24xf32>
    %63 = arith.mulf %58, %62 : vector<2x24x24xf32>
    %64 = arith.truncf %63 : vector<2x24x24xf32> to vector<2x24x24xbf16>
    "tpu.trace_start"() <{level = 10 : i32, message = "hnm,hmd->hnd"}> : () -> ()
    %cst_23 = arith.constant dense<0.000000e+00> : vector<2x24x32xf32>
    %65 = tpu.matmul %64, %45, %cst_23 {dimension_numbers = #tpu.dot_dimension_numbers<[2], [1], [1], [2], [0, 0, 0, 1, 1, 2], [0], [0]>} : vector<2x24x24xbf16>, vector<2x24x32xbf16>, vector<2x24x32xf32> -> vector<2x24x32xf32>
    "tpu.trace_stop"() : () -> ()
    %66 = tpu.transpose %65, [1, 0, 2] : vector<2x24x32xf32> -> vector<24x2x32xf32>
    %67 = vector.shape_cast %66 : vector<24x2x32xf32> to vector<24x64xf32>
    %68 = arith.truncf %67 : vector<24x64xf32> to vector<24x64xbf16>
    %c0_24 = arith.constant 0 : index
    %c0_25 = arith.constant 0 : index
    %c0_26 = arith.constant 0 : index
    %69 = vector.load %arg7[%c0_24, %c0_25, %c0_26] : memref<1x64x64xbf16, #tpu.memory_space<vmem>>, vector<1x64x64xbf16>
    %70 = vector.shape_cast %69 : vector<1x64x64xbf16> to vector<64x64xbf16>
    %cst_27 = arith.constant dense<0.000000e+00> : vector<24x64xf32>
    %71 = tpu.matmul %68, %70, %cst_27 {dimension_numbers = #tpu.dot_dimension_numbers<[1], [0], [0], [1], [0, 0, 1, 1], [], []>} : vector<24x64xbf16>, vector<64x64xbf16>, vector<24x64xf32> -> vector<24x64xf32>
    %c0_28 = arith.constant 0 : index
    %c0_29 = arith.constant 0 : index
    %c0_30 = arith.constant 0 : index
    %72 = vector.load %arg8[%c0_28, %c0_29, %c0_30] : memref<1x1x64xf32, #tpu.memory_space<vmem>>, vector<1x1x64xf32>
    %73 = vector.shape_cast %72 : vector<1x1x64xf32> to vector<1x64xf32>
    %74 = vector.broadcast %73 : vector<1x64xf32> to vector<24x64xf32>
    %75 = arith.addf %71, %74 : vector<24x64xf32>
    %76 = arith.addf %3, %75 : vector<24x64xf32>
    %c0_31 = arith.constant 0 : index
    %c0_32 = arith.constant 0 : index
    %c0_33 = arith.constant 0 : index
    %77 = vector.load %arg9[%c0_31, %c0_32, %c0_33] : memref<1x1x64xf32, #tpu.memory_space<vmem>>, vector<1x1x64xf32>
    %78 = vector.shape_cast %77 : vector<1x1x64xf32> to vector<1x64xf32>
    %c0_34 = arith.constant 0 : index
    %c0_35 = arith.constant 0 : index
    %c0_36 = arith.constant 0 : index
    %79 = vector.load %arg10[%c0_34, %c0_35, %c0_36] : memref<1x1x64xf32, #tpu.memory_space<vmem>>, vector<1x1x64xf32>
    %80 = vector.shape_cast %79 : vector<1x1x64xf32> to vector<1x64xf32>
    %cst_37 = arith.constant dense<0.000000e+00> : vector<24xf32>
    %81 = vector.multi_reduction <add>, %76, %cst_37 [1] : vector<24x64xf32> to vector<24xf32>
    %82 = vector.shape_cast %81 : vector<24xf32> to vector<24x1xf32>
    %cst_38 = arith.constant 6.400000e+01 : f32
    %83 = vector.broadcast %cst_38 : f32 to vector<24x1xf32>
    %84 = arith.divf %82, %83 : vector<24x1xf32>
    %85 = vector.broadcast %84 : vector<24x1xf32> to vector<24x64xf32>
    %86 = arith.subf %76, %85 : vector<24x64xf32>
    %87 = arith.mulf %86, %86 : vector<24x64xf32>
    %cst_39 = arith.constant dense<0.000000e+00> : vector<24xf32>
    %88 = vector.multi_reduction <add>, %87, %cst_39 [1] : vector<24x64xf32> to vector<24xf32>
    %89 = vector.shape_cast %88 : vector<24xf32> to vector<24x1xf32>
    %cst_40 = arith.constant 6.400000e+01 : f32
    %90 = vector.broadcast %cst_40 : f32 to vector<24x1xf32>
    %91 = arith.divf %89, %90 : vector<24x1xf32>
    %92 = vector.broadcast %84 : vector<24x1xf32> to vector<24x64xf32>
    %93 = arith.subf %76, %92 : vector<24x64xf32>
    %cst_41 = arith.constant 9.99999997E-7 : f32
    %94 = vector.broadcast %cst_41 : f32 to vector<24x1xf32>
    %95 = arith.addf %91, %94 : vector<24x1xf32>
    %96 = math.rsqrt %95 : vector<24x1xf32>
    %97 = vector.broadcast %96 : vector<24x1xf32> to vector<24x64xf32>
    %98 = arith.mulf %93, %97 : vector<24x64xf32>
    %99 = vector.broadcast %78 : vector<1x64xf32> to vector<24x64xf32>
    %100 = arith.mulf %98, %99 : vector<24x64xf32>
    %101 = vector.broadcast %80 : vector<1x64xf32> to vector<24x64xf32>
    %102 = arith.addf %100, %101 : vector<24x64xf32>
    %103 = arith.truncf %102 : vector<24x64xf32> to vector<24x64xbf16>
    %c0_42 = arith.constant 0 : index
    %c0_43 = arith.constant 0 : index
    %c0_44 = arith.constant 0 : index
    %104 = vector.load %arg11[%c0_42, %c0_43, %c0_44] : memref<1x64x256xbf16, #tpu.memory_space<vmem>>, vector<1x64x256xbf16>
    %105 = vector.shape_cast %104 : vector<1x64x256xbf16> to vector<64x256xbf16>
    %cst_45 = arith.constant dense<0.000000e+00> : vector<24x256xf32>
    %106 = tpu.matmul %103, %105, %cst_45 {dimension_numbers = #tpu.dot_dimension_numbers<[1], [0], [0], [1], [0, 0, 1, 1], [], []>} : vector<24x64xbf16>, vector<64x256xbf16>, vector<24x256xf32> -> vector<24x256xf32>
    %c0_46 = arith.constant 0 : index
    %c0_47 = arith.constant 0 : index
    %c0_48 = arith.constant 0 : index
    %107 = vector.load %arg12[%c0_46, %c0_47, %c0_48] : memref<1x1x256xf32, #tpu.memory_space<vmem>>, vector<1x1x256xf32>
    %108 = vector.shape_cast %107 : vector<1x1x256xf32> to vector<1x256xf32>
    %109 = vector.broadcast %108 : vector<1x256xf32> to vector<24x256xf32>
    %110 = arith.addf %106, %109 : vector<24x256xf32>
    %cst_49 = arith.constant 5.000000e-01 : f32
    %111 = vector.broadcast %cst_49 : f32 to vector<24x256xf32>
    %112 = arith.mulf %111, %110 : vector<24x256xf32>
    %cst_50 = arith.constant 4.471500e-02 : f32
    %113 = vector.broadcast %cst_50 : f32 to vector<24x256xf32>
    %114 = arith.mulf %113, %110 : vector<24x256xf32>
    %115 = arith.mulf %114, %110 : vector<24x256xf32>
    %116 = arith.mulf %115, %110 : vector<24x256xf32>
    %117 = arith.addf %110, %116 : vector<24x256xf32>
    %cst_51 = arith.constant 0.797884583 : f32
    %118 = vector.broadcast %cst_51 : f32 to vector<24x256xf32>
    %119 = arith.mulf %118, %117 : vector<24x256xf32>
    %120 = math.tanh %119 : vector<24x256xf32>
    %cst_52 = arith.constant 1.000000e+00 : f32
    %121 = vector.broadcast %cst_52 : f32 to vector<24x256xf32>
    %122 = arith.addf %121, %120 : vector<24x256xf32>
    %123 = arith.mulf %112, %122 : vector<24x256xf32>
    %124 = arith.truncf %123 : vector<24x256xf32> to vector<24x256xbf16>
    %c0_53 = arith.constant 0 : index
    %c0_54 = arith.constant 0 : index
    %c0_55 = arith.constant 0 : index
    %125 = vector.load %arg13[%c0_53, %c0_54, %c0_55] : memref<1x256x64xbf16, #tpu.memory_space<vmem>>, vector<1x256x64xbf16>
    %126 = vector.shape_cast %125 : vector<1x256x64xbf16> to vector<256x64xbf16>
    %cst_56 = arith.constant dense<0.000000e+00> : vector<24x64xf32>
    %127 = tpu.matmul %124, %126, %cst_56 {dimension_numbers = #tpu.dot_dimension_numbers<[1], [0], [0], [1], [0, 0, 1, 1], [], []>} : vector<24x256xbf16>, vector<256x64xbf16>, vector<24x64xf32> -> vector<24x64xf32>
    %128 = arith.addf %76, %127 : vector<24x64xf32>
    %c0_57 = arith.constant 0 : index
    %c0_58 = arith.constant 0 : index
    %c0_59 = arith.constant 0 : index
    %129 = vector.load %arg14[%c0_57, %c0_58, %c0_59] : memref<1x1x64xf32, #tpu.memory_space<vmem>>, vector<1x1x64xf32>
    %130 = vector.shape_cast %129 : vector<1x1x64xf32> to vector<1x64xf32>
    %131 = vector.broadcast %130 : vector<1x64xf32> to vector<24x64xf32>
    %132 = arith.addf %128, %131 : vector<24x64xf32>
    %c0_60 = arith.constant 0 : index
    %c0_61 = arith.constant 0 : index
    %133 = vector.load %arg16[%c0_60, %c0_61] : memref<24x64xf32, #tpu.memory_space<vmem>>, vector<24x64xf32>
    tpu.vector_store %arg16[%c0_60, %c0_61], %132 {strides = array<i32>} : memref<24x64xf32, #tpu.memory_space<vmem>>, vector<24x64xf32>,
    %c1_i32 = arith.constant 1 : i32
    %134 = arith.cmpi eq, %arg1, %c1_i32 : i32
    %135 = arith.extui %134 : i1 to i32
    %c0_i32_62 = arith.constant 0 : i32
    %136 = arith.cmpi ne, %135, %c0_i32_62 : i32
    scf.if %136 {
      %137 = tpu.iota {dimensions = array<i32: 0>} : vector<24x1xi32>
      %c1_i32_63 = arith.constant 1 : i32
      %138 = vector.broadcast %c1_i32_63 : i32 to vector<24x1xi32>
      %139 = arith.cmpi sge, %137, %138 : vector<24x1xi32>
      %c17_i32_64 = arith.constant 17 : i32
      %140 = vector.broadcast %c17_i32_64 : i32 to vector<24x1xi32>
      %141 = arith.cmpi slt, %137, %140 : vector<24x1xi32>
      %142 = arith.andi %139, %141 : vector<24x1xi1>
      %143 = arith.extui %142 : vector<24x1xi1> to vector<24x1xi32>
      %144 = arith.sitofp %143 : vector<24x1xi32> to vector<24x1xf32>
      %145 = vector.broadcast %144 : vector<24x1xf32> to vector<24x64xf32>
      %146 = arith.mulf %132, %145 : vector<24x64xf32>
      %cst_65 = arith.constant dense<0.000000e+00> : vector<64xf32>
      %147 = vector.multi_reduction <add>, %146, %cst_65 [0] : vector<24x64xf32> to vector<64xf32>
      %148 = vector.shape_cast %147 : vector<64xf32> to vector<1x64xf32>
      %cst_66 = arith.constant 1.600000e+01 : f32
      %149 = vector.broadcast %cst_66 : f32 to vector<1x64xf32>
      %150 = arith.divf %148, %149 : vector<1x64xf32>
      %c0_67 = arith.constant 0 : index
      %c0_68 = arith.constant 0 : index
      %c0_69 = arith.constant 0 : index
      %151 = vector.load %arg15[%c0_67, %c0_68, %c0_69] : memref<1x1x64xf32, #tpu.memory_space<vmem>>, vector<1x1x64xf32>
      %152 = vector.shape_cast %151 : vector<1x1x64xf32> to vector<1x64xf32>
      %153 = vector.shape_cast %150 : vector<1x64xf32> to vector<1x1x64xf32>
      tpu.vector_store %arg15[%c0_67, %c0_68, %c0_69], %153 {strides = array<i32>} : memref<1x1x64xf32, #tpu.memory_space<vmem>>, vector<1x1x64xf32>,
    } else {
    }
    return
  }
  func.func @transform_0(%arg0: i32, %arg1: i32) -> (i32, i32, i32) {
    %c0_i32 = arith.constant 0 : i32
    %c0_i32_0 = arith.constant 0 : i32
    %c0_i32_1 = arith.constant 0 : i32
    return %arg0, %c0_i32, %c0_i32_0 : i32, i32, i32
  }
  func.func @transform_1(%arg0: i32, %arg1: i32) -> (i32, i32, i32) {
    %c0_i32 = arith.constant 0 : i32
    %c0_i32_0 = arith.constant 0 : i32
    %c0_i32_1 = arith.constant 0 : i32
    return %arg1, %c0_i32, %c0_i32_0 : i32, i32, i32
  }
  func.func @transform_2(%arg0: i32, %arg1: i32) -> (i32, i32, i32) {
    %c0_i32 = arith.constant 0 : i32
    %c0_i32_0 = arith.constant 0 : i32
    %c0_i32_1 = arith.constant 0 : i32
    return %arg1, %c0_i32, %c0_i32_0 : i32, i32, i32
  }
  func.func @transform_3(%arg0: i32, %arg1: i32) -> (i32, i32, i32) {
    %c0_i32 = arith.constant 0 : i32
    %c0_i32_0 = arith.constant 0 : i32
    %c0_i32_1 = arith.constant 0 : i32
    return %arg1, %c0_i32, %c0_i32_0 : i32, i32, i32
  }
  func.func @transform_4(%arg0: i32, %arg1: i32) -> (i32, i32, i32) {
    %c0_i32 = arith.constant 0 : i32
    %c0_i32_0 = arith.constant 0 : i32
    %c0_i32_1 = arith.constant 0 : i32
    return %arg1, %c0_i32, %c0_i32_0 : i32, i32, i32
  }
  func.func @transform_5(%arg0: i32, %arg1: i32) -> (i32, i32, i32) {
    %c0_i32 = arith.constant 0 : i32
    %c0_i32_0 = arith.constant 0 : i32
    %c0_i32_1 = arith.constant 0 : i32
    return %arg1, %c0_i32, %c0_i32_0 : i32, i32, i32
  }
  func.func @transform_6(%arg0: i32, %arg1: i32) -> (i32, i32, i32) {
    %c0_i32 = arith.constant 0 : i32
    %c0_i32_0 = arith.constant 0 : i32
    %c0_i32_1 = arith.constant 0 : i32
    return %arg1, %c0_i32, %c0_i32_0 : i32, i32, i32
  }
  func.func @transform_7(%arg0: i32, %arg1: i32) -> (i32, i32, i32) {
    %c0_i32 = arith.constant 0 : i32
    %c0_i32_0 = arith.constant 0 : i32
    %c0_i32_1 = arith.constant 0 : i32
    return %arg1, %c0_i32, %c0_i32_0 : i32, i32, i32
  }
  func.func @transform_8(%arg0: i32, %arg1: i32) -> (i32, i32, i32) {
    %c0_i32 = arith.constant 0 : i32
    %c0_i32_0 = arith.constant 0 : i32
    %c0_i32_1 = arith.constant 0 : i32
    return %arg1, %c0_i32, %c0_i32_0 : i32, i32, i32
  }
  func.func @transform_9(%arg0: i32, %arg1: i32) -> (i32, i32, i32) {
    %c0_i32 = arith.constant 0 : i32
    %c0_i32_0 = arith.constant 0 : i32
    %c0_i32_1 = arith.constant 0 : i32
    return %arg1, %c0_i32, %c0_i32_0 : i32, i32, i32
  }
  func.func @transform_10(%arg0: i32, %arg1: i32) -> (i32, i32, i32) {
    %c0_i32 = arith.constant 0 : i32
    %c0_i32_0 = arith.constant 0 : i32
    %c0_i32_1 = arith.constant 0 : i32
    return %arg1, %c0_i32, %c0_i32_0 : i32, i32, i32
  }
  func.func @transform_11(%arg0: i32, %arg1: i32) -> (i32, i32, i32) {
    %c0_i32 = arith.constant 0 : i32
    %c0_i32_0 = arith.constant 0 : i32
    %c0_i32_1 = arith.constant 0 : i32
    return %arg1, %c0_i32, %c0_i32_0 : i32, i32, i32
  }
  func.func @transform_12(%arg0: i32, %arg1: i32) -> (i32, i32, i32) {
    %c0_i32 = arith.constant 0 : i32
    %c0_i32_0 = arith.constant 0 : i32
    %c0_i32_1 = arith.constant 0 : i32
    return %arg1, %c0_i32, %c0_i32_0 : i32, i32, i32
  }
  func.func @transform_13(%arg0: i32, %arg1: i32) -> (i32, i32, i32) {
    %c0_i32 = arith.constant 0 : i32
    %c0_i32_0 = arith.constant 0 : i32
    %c0_i32_1 = arith.constant 0 : i32
    return %arg0, %c0_i32, %c0_i32_0 : i32, i32, i32
  }
}

module attributes {stable_mosaic.version = 11 : i64} {
  func.func @_head_kernel(%arg0: memref<2x64xf32, #tpu.memory_space<vmem>>, %arg1: memref<1x64xf32, #tpu.memory_space<vmem>>, %arg2: memref<1x64xf32, #tpu.memory_space<vmem>>, %arg3: memref<64x128xbf16, #tpu.memory_space<vmem>>, %arg4: memref<1x128xf32, #tpu.memory_space<vmem>>, %arg5: memref<2x128xf32, #tpu.memory_space<vmem>>) attributes {dimension_semantics = [], scalar_prefetch = 0 : i64, scratch_operands = 0 : i64, tpu.core_type = #tpu.core_type<tc>} {
    %c0 = arith.constant 0 : index
    %c0_0 = arith.constant 0 : index
    %0 = vector.load %arg0[%c0, %c0_0] : memref<2x64xf32, #tpu.memory_space<vmem>>, vector<2x64xf32>
    %c0_1 = arith.constant 0 : index
    %c0_2 = arith.constant 0 : index
    %1 = vector.load %arg1[%c0_1, %c0_2] : memref<1x64xf32, #tpu.memory_space<vmem>>, vector<1x64xf32>
    %c0_3 = arith.constant 0 : index
    %c0_4 = arith.constant 0 : index
    %2 = vector.load %arg2[%c0_3, %c0_4] : memref<1x64xf32, #tpu.memory_space<vmem>>, vector<1x64xf32>
    %cst = arith.constant dense<0.000000e+00> : vector<2xf32>
    %3 = vector.multi_reduction <add>, %0, %cst [1] : vector<2x64xf32> to vector<2xf32>
    %4 = vector.shape_cast %3 : vector<2xf32> to vector<2x1xf32>
    %cst_5 = arith.constant 6.400000e+01 : f32
    %5 = vector.broadcast %cst_5 : f32 to vector<2x1xf32>
    %6 = arith.divf %4, %5 : vector<2x1xf32>
    %7 = vector.broadcast %6 : vector<2x1xf32> to vector<2x64xf32>
    %8 = arith.subf %0, %7 : vector<2x64xf32>
    %9 = arith.mulf %8, %8 : vector<2x64xf32>
    %cst_6 = arith.constant dense<0.000000e+00> : vector<2xf32>
    %10 = vector.multi_reduction <add>, %9, %cst_6 [1] : vector<2x64xf32> to vector<2xf32>
    %11 = vector.shape_cast %10 : vector<2xf32> to vector<2x1xf32>
    %cst_7 = arith.constant 6.400000e+01 : f32
    %12 = vector.broadcast %cst_7 : f32 to vector<2x1xf32>
    %13 = arith.divf %11, %12 : vector<2x1xf32>
    %14 = vector.broadcast %6 : vector<2x1xf32> to vector<2x64xf32>
    %15 = arith.subf %0, %14 : vector<2x64xf32>
    %cst_8 = arith.constant 9.99999997E-7 : f32
    %16 = vector.broadcast %cst_8 : f32 to vector<2x1xf32>
    %17 = arith.addf %13, %16 : vector<2x1xf32>
    %18 = math.rsqrt %17 : vector<2x1xf32>
    %19 = vector.broadcast %18 : vector<2x1xf32> to vector<2x64xf32>
    %20 = arith.mulf %15, %19 : vector<2x64xf32>
    %21 = vector.broadcast %1 : vector<1x64xf32> to vector<2x64xf32>
    %22 = arith.mulf %20, %21 : vector<2x64xf32>
    %23 = vector.broadcast %2 : vector<1x64xf32> to vector<2x64xf32>
    %24 = arith.addf %22, %23 : vector<2x64xf32>
    %25 = arith.truncf %24 : vector<2x64xf32> to vector<2x64xbf16>
    %c0_9 = arith.constant 0 : index
    %c0_10 = arith.constant 0 : index
    %26 = vector.load %arg3[%c0_9, %c0_10] : memref<64x128xbf16, #tpu.memory_space<vmem>>, vector<64x128xbf16>
    %cst_11 = arith.constant dense<0.000000e+00> : vector<2x128xf32>
    %27 = tpu.matmul %25, %26, %cst_11 {dimension_numbers = #tpu.dot_dimension_numbers<[1], [0], [0], [1], [0, 0, 1, 1], [], []>} : vector<2x64xbf16>, vector<64x128xbf16>, vector<2x128xf32> -> vector<2x128xf32>
    %c0_12 = arith.constant 0 : index
    %c0_13 = arith.constant 0 : index
    %28 = vector.load %arg4[%c0_12, %c0_13] : memref<1x128xf32, #tpu.memory_space<vmem>>, vector<1x128xf32>
    %29 = vector.broadcast %28 : vector<1x128xf32> to vector<2x128xf32>
    %30 = arith.addf %27, %29 : vector<2x128xf32>
    %c0_14 = arith.constant 0 : index
    %c0_15 = arith.constant 0 : index
    %31 = vector.load %arg5[%c0_14, %c0_15] : memref<2x128xf32, #tpu.memory_space<vmem>>, vector<2x128xf32>
    tpu.vector_store %arg5[%c0_14, %c0_15], %30 {strides = array<i32>} : memref<2x128xf32, #tpu.memory_space<vmem>>, vector<2x128xf32>,
    return
  }
}

</mosaic_0001>

<bundles_post_ra>
// kernel: eva_forward.3
= control target key start
LH: loop header
LB: loop body
LE: loop exit
PB: predicated region body
PF: predicated region fallthrough
CT: control target
= control target key end

     0   :  { %vm57_vm0 = vcmask 392192   ;;  %vm83_vm1 = vcmask 523264   ;;  %s173_s1 = inlined_call_operand.vmem [shape: bf16[48,64], index: 1, kind: input, shape index: {}]   ;;  %s174_s2 = inlined_call_operand.vmem [shape: f32[1,64], index: 2, kind: input, shape index: {}]   ;;  %s175_s0 = inlined_call_operand.vmem [shape: bf16[32,48], index: 0, kind: input, shape index: {}]   ;;  %s176_s3 = inlined_call_operand.vmem [shape: f32[32,64], index: 3, kind: output, shape index: {}]  }
   0x1   :  { %v118_v0 = vld [vmem:[%s173_s1 + $0x10] sm:$0xff]  ;;  %v117_v1 = vld [vmem:[%s173_s1 + $0x8] sm:$0xff]  ;;  %v116_v2 = vld [vmem:[%s173_s1] sm:$0xff] }
   0x2   :  { %69 = vmatpush.bf16.msra.mxu0 %v118_v0  ;;  %119 = vmatpush.bf16.msra.mxu1 %v118_v0  ;;  %v114_v3 = vld [vmem:[%s175_s0] sm:$0xff]  ;;  %v115_v4 = vld [vmem:[%s175_s0 + $0x8] sm:$0xff] }
   0x3   :  { %v122_v5 = vld [vmem:[%s174_s2] ss:$0 sm:$0xff] }
   0x6   :  { %70 = vmatpush.bf16.msra.mxu0 %v117_v1  ;;  %120 = vmatpush.bf16.msra.mxu1 %v117_v1 }
   0xa   :  { %71 = vmatpush.bf16.msra.mxu0 %v116_v2  ;;  %121 = vmatpush.bf16.msra.mxu1 %v116_v2 }
   0xd   :  { %112 = vmatmul.msk.bf16.vlgmr.msra.gmra.mxu0 %vm57_vm0, %v114_v3  ;;  %113 = vmatmul.msk.bf16.vlgmr.msra.gmra.mxu1 %vm57_vm0, %v115_v4 }
  0x8a   :  { %v73_v6 = vpop.f32.mrf.mxu0  ;;  %v78_v7 = vpop.f32.mrf.mxu1 }
  0x8b   :  { %v74_v8 = vadd.f32 %v122_v5, %v73_v6  ;;  %v79_v9 = vadd.f32 %v122_v5, %v78_v7 }
  0x8d   :  { %84 = vst.msk [vmem:[%s176_s3] sm:$0xff] %vm83_vm1, %v74_v8 }
  0x8e   :  { %86 = vst.msk [vmem:[%s176_s3 + $0x10] sm:$0xff] %vm83_vm1, %v79_v9 }
  0x92   :  { %v75_v10 = vpop.f32.mrf.mxu0  ;;  %v80_v11 = vpop.f32.mrf.mxu1 }
  0x93   :  { %v76_v12 = vadd.f32 %v122_v5, %v75_v10  ;;  %v81_v13 = vadd.f32 %v122_v5, %v80_v11 }
  0x95   :  { %85 = vst.msk [vmem:[%s176_s3 + $0x8] sm:$0xff] %vm83_vm1, %v76_v12 }
  0x96   :  { %87 = vst.msk [vmem:[%s176_s3 + $0x18] sm:$0xff] %vm83_vm1, %v81_v13 }

// kernel: eva_forward.5
= control target key start
LH: loop header
LB: loop body
LE: loop exit
PB: predicated region body
PF: predicated region fallthrough
CT: control target
= control target key end

     0   :  { %vm25_vm0 = vcmask 517120   ;;  %s251_s0 = inlined_call_operand.vmem [shape: f32[2,64], index: 0, kind: input, shape index: {}]   ;;  %s252_s1 = inlined_call_operand.vmem [shape: f32[1,64], index: 1, kind: input, shape index: {}]   ;;  %s253_s2 = inlined_call_operand.vmem [shape: f32[1,64], index: 2, kind: input, shape index: {}]   ;;  %s254_s3 = inlined_call_operand.vmem [shape: bf16[64,128], index: 3, kind: input, shape index: {}]   ;;  %s255_s4 = inlined_call_operand.vmem [shape: f32[1,128], index: 4, kind: input, shape index: {}]   ;;  %s256_s5 = inlined_call_operand.hbm [shape: f32[2,128], index: 5, kind: output, shape index: {}]  }
   0x1   :  { %v22_v0 = vld [vmem:[%s251_s0] sm:$0x3] }
   0x2   :  { %v26_v1 = vsel %vm25_vm0, %v22_v0, 0.0 }
   0x3   :  { %27 = vadd.xlane.f32.xlu0 %v26_v1 }
   0x4   :  { %10 = vsyncpa [#allocation3], 0  ;;  %v190_v2 = vmov 64.0   ;;  %v154_v14 = vld [vmem:[%s254_s3 + $0x18] sm:$0xff]  ;;  %v153_v15 = vld [vmem:[%s254_s3 + $0x10] sm:$0xff]  ;;  %vm100_vm5 = vcmask 523264  }
   0x5   :  { %160 = vrcp.f32 %v190_v2  ;;  %108 = vmatpush.bf16.msra.mxu0 %v154_v14  ;;  %v152_v16 = vld [vmem:[%s254_s3 + $0x8] sm:$0xff]  ;;  %v151_v17 = vld [vmem:[%s254_s3] sm:$0xff]  ;;  %s191_s7 = smov [#allocation2]  }
   0x6   :  { %v157_v27 = vld [vmem:[%s252_s1] ss:$0 sm:$0xff]  ;;  %s123_s8 = sshll.u32 %s191_s7, 4  ;;  %s125_s1 = sshll.u32 %s256_s5, 4  ;;  %s124_s8 = int_to_ptr.vmem [resolvable:$true] %s123_s8  ;;  %s126_s1 = int_to_ptr.hbm [resolvable:$true] %s125_s1 }
   0x7   :  { %v158_v30 = vld [vmem:[%s253_s2] ss:$0 sm:$0xff] }
   0x8   :  { %v159_v34 = vld [vmem:[%s255_s4] ss:$0 sm:$0xff] }
   0x9   :  { %109 = vmatpush.bf16.msra.mxu0 %v153_v15 }
   0xb   :  { %v161_v3 = vpop.eup %160 }
   0xc   :  { %v30_v4 = vmul.f32 64.0, %v161_v3  ;;  %vm34_vm1 = vweird.f32 %v161_v3 }
   0xd   :  { %110 = vmatpush.bf16.msra.mxu0 %v152_v16 }
   0xe   :  { %v31_v5 = vsub.f32 1.0, %v30_v4 }
  0x10   :  { %v32_v6 = vmul.f32 %v161_v3, %v31_v5 }
  0x11   :  { %111 = vmatpush.bf16.msra.mxu0 %v151_v17 }
  0x12   :  { %v33_v7 = vadd.f32 %v161_v3, %v32_v6 }
  0x14   :  { %v35_v8 = vsel %vm34_vm1, %v161_v3, %v33_v7 }
  0x76   :  { %v28_v9 = vpop.xlane.xlu0 %27 }
  0x77   :  { %v36_v10 = vmul.f32 %v35_v8, %v28_v9 }
  0x79   :  { %v37_v11 = vsub.f32 %v22_v0, %v36_v10 }
  0x7b   :  { %v38_v12 = vmul.f32 %v37_v11, %v37_v11 }
  0x7d   :  { %v39_v13 = vsel %vm25_vm0, %v38_v12, 0.0 }
  0x7e   :  { %40 = vadd.xlane.f32.xlu0 %v39_v13 }
  0xf1   :  { %v41_v18 = vpop.xlane.xlu0 %40 }
  0xf2   :  { %v42_v19 = vmul.f32 %v41_v18, %v35_v8 }
  0xf4   :  { %v43_v20 = vadd.f32 1e-06, %v42_v19 }
  0xf6   :  { %162 = vrsqrt.f32 %v43_v20  ;;  %vm50_vm3 = vweird.f32 %v43_v20 }
  0xfc   :  { %v163_v21 = vpop.eup %162 }
  0xfd   :  { %v45_v22 = vmul.f32 %v163_v21, %v43_v20  ;;  %vm51_vm2 = vweird.f32 %v163_v21 }
  0xfe   :  { %vm52_vm4 = vmor %vm50_vm3, %vm51_vm2 }
  0xff   :  { %v46_v23 = vmul.f32 %v163_v21, %v45_v22 }
 0x101   :  { %v47_v24 = vmul.f32 0.5, %v46_v23 }
 0x103   :  { %v48_v25 = vsub.f32 1.5, %v47_v24 }
 0x105   :  { %v49_v26 = vmul.f32 %v163_v21, %v48_v25 }
 0x107   :  { %v53_v28 = vsel %vm52_vm4, %v163_v21, %v49_v26 }
 0x108   :  { %v54_v29 = vmul.f32 %v53_v28, %v37_v11 }
 0x10a   :  { %v58_v31 = vmul.f32 %v157_v27, %v54_v29 }
 0x10c   :  { %v62_v32 = vadd.f32 %v158_v30, %v58_v31 }
 0x10e   :  { %v63_v33 = vpack.c.bf16 %v62_v32, %v62_v32 }
 0x110   :  { %150 = vmatmul.msk.bf16.vlgmr.msra.gmra.mxu0 %vm100_vm5, %v63_v33 }
 0x18d   :  { %v113_v35 = vpop.f32.mrf.mxu0 }
 0x18e   :  { %v114_v36 = vadd.f32 %v159_v34, %v113_v35 }
 0x190   :  { %117 = vst [vmem:[#allocation2] sm:$0x3] %v114_v36 }
 0x191   :  { %128 = dma.vmem_to_hbm [thread:$0]  %s124_s8, 32, %s126_s1, [#allocation3]  }
 0x195   :  { %v115_v37 = vpop.f32.mrf.mxu0 }
 0x196   :  { %188 = dma.done.wait [#allocation3], 32  }
 0x197   :  { %189 = vsyncadd [#allocation3], 4294967264 }
 0x198   :  { %133 = vsyncpa [#allocation3], 1 }

// kernel: eva_forward.4
= control target key start
LH: loop header
LB: loop body
LE: loop exit
PB: predicated region body
PF: predicated region fallthrough
CT: control target
= control target key end

     0   :  { %s3267_s25 = smov 0   ;;  %s3269_s26 = smov 0   ;;  %s4241_s0 = inlined_call_operand.vmem [shape: f32[2,24,64], index: 0, kind: input, shape index: {}]   ;;  %s4242_s1 = inlined_call_operand.vmem [shape: f32[2,1,64], index: 1, kind: input, shape index: {}]   ;;  %s4243_s2 = inlined_call_operand.vmem [shape: f32[2,1,64], index: 2, kind: input, shape index: {}]   ;;  %s4244_s3 = inlined_call_operand.vmem [shape: bf16[2,64,192], index: 3, kind: input, shape index: {}]   ;;  %s4245_s4 = inlined_call_operand.vmem [shape: f32[2,1,192], index: 4, kind: input, shape index: {}]   ;;  %s4246_s5 = inlined_call_operand.vmem [shape: bf16[2,64,64], index: 5, kind: input, shape index: {}]   ;;  %s4247_s6 = inlined_call_operand.vmem [shape: f32[2,1,64], index: 6, kind: input, shape index: {}]   ;;  %s4248_s7 = inlined_call_operand.vmem [shape: f32[2,1,64], index: 7, kind: input, shape index: {}]   ;;  %s4249_s8 = inlined_call_operand.vmem [shape: f32[2,1,64], index: 8, kind: input, shape index: {}]   ;;  %s4250_s9 = inlined_call_operand.vmem [shape: bf16[2,64,256], index: 9, kind: input, shape index: {}]   ;;  %s4251_s10 = inlined_call_operand.vmem [shape: f32[2,1,256], index: 10, kind: input, shape index: {}]   ;;  %s4252_s11 = inlined_call_operand.vmem [shape: bf16[2,256,64], index: 11, kind: input, shape index: {}]   ;;  %s4253_s12 = inlined_call_operand.vmem [shape: f32[2,1,64], index: 12, kind: input, shape index: {}]   ;;  %s4254_s13 = inlined_call_operand.vmem [shape: f32[2,1,64], index: 13, kind: output, shape index: {}]  }
   0x1   :  { %4260 = sst [smem:[#allocation10_spill]] %s4241_s0  ;;  %s3271_s27 = smov 0  }
   0x2   :  { %4261 = sst [smem:[#allocation11_spill]] %s4244_s3  ;;  %s3273_s28 = smov 0  }
   0x3   :  { %4262 = sst [smem:[#allocation12_spill]] %s4245_s4  ;;  %s3275_s29 = smov 0  }
   0x4   :  { %4263 = sst [smem:[#allocation13_spill]] %s4246_s5 }
   0x5   :  { %4264 = sst [smem:[#allocation14_spill]] %s4252_s11 }
   0x6   :  { %4265 = sst [smem:[#allocation15_spill]] %s4254_s13 }
   0x7 LB: > { %4266 = sst [smem:[#allocation3_spill]] %s3171_s25  ;;  %s32_s30 = sadd.s32 1, %s3179_s27  ;;  %s3187_s29 = sphi %s3275_s29, %s23_s29   ;;  %s3183_s28 = sphi %s3273_s28, %s4292_s28   ;;  %s3179_s27 = sphi %s3271_s27, %s4291_s27   ;;  %s3175_s26 = sphi %s3269_s26, %s4290_s26   ;;  %s3171_s25 = sphi %s3267_s25, %s4289_s25  }
   0x8   : > { %4267 = sst [smem:[#allocation4_spill]] %s3179_s27  ;;  %s35_s14 = sadd.s32 1, %s3183_s28 }
   0x9   : > { %4268 = sst [smem:[#allocation5_spill]] %s3183_s28  ;;  %p33_p0 = scmp.ge.s32.totalorder %s32_s30, 2 }
   0xa   : > { %4269 = sst [smem:[#allocation6_spill]] %s3187_s29  ;;  %p2785_p1 = scmp.ge.s32.totalorder %s3187_s29, 1 }
   0xb   : > { %p505_p2 = scmp.lt.s32.totalorder %s3187_s29, 5  ;;  %s4294_s30 = smov (%p33_p0, %s32_s30), 0 }
   0xc   : > { %4270 = sst [smem:[#allocation7_spill]] %s4294_s30  ;;  %s4296_s14 = smov (!%p33_p0, %s35_s14), %s3183_s28 }
   0xd   : > { %p506_p3 = pnand %p2785_p1, %p505_p2  ;;  %p37_p4 = scmp.ge.s32.totalorder %s4296_s14, 2 }
   0xf   : > { %s4298_s14 = smov (%p37_p4, %s4296_s14), 0  ;;  %509 = sbr.rel (%p506_p3) target bundleno = 2110 (0x83e), region = 72 }
  0x10   : > { %4271 = sst [smem:[#allocation8_spill]] %s4298_s14 }
  0x14   : > { %p593_p5 = scmp.lt.s32.totalorder %s3175_s26, 1  ;;  %p598_p6 = scmp.lt.s32.totalorder %s3171_s25, 1 }
  0x15   : > { %s4274_s0 = sld [smem:[#allocation10_spill]] }
  0x16   : > { %s4300_s26 = smov (!%p593_p5, %s3175_s26), 1  ;;  %s4275_s3 = sld [smem:[#allocation11_spill]] }
  0x17   : > { %4272 = sst [smem:[#allocation9_spill]] %s4300_s26  ;;  %s3009_s16 = smul.u32 24, %s4300_s26 }
  0x18   : > { %s3303_s15 = scalar_select %p598_p6, %s3171_s25, 1 }
  0x19   : > { %s4276_s4 = sld [smem:[#allocation12_spill]] }
  0x1a   : > { %s2965_s29 = sshll.u32 %s3303_s15, 6  ;;  %s2789_s18 = sshll.u32 %s3303_s15, 1 }
  0x1b   : > { %s597_s27 = scalar_lea.vmem %s4274_s0, %s3009_s16  ;;  %s2966_s21 = sshll.u32 %s3303_s15, 5 }
  0x1c   : > { %s3325_s17 = scalar_lea.vmem %s4275_s3, %s2965_s29  ;;  %s4277_s5 = sld [smem:[#allocation13_spill]] }
  0x1d   : > { %s626_s13 = scalar_lea.vmem %s4249_s8, %s3303_s15  ;;  %s3354_s26 = scalar_lea.vmem %s4250_s9, %s2965_s29 }
  0x1e   : > { %s3359_s23 = scalar_lea.vmem %s4251_s10, %s2789_s18  ;;  %s2968_s28 = sshll.u32 %s3303_s15, 7 }
  0x1f   : > { %s3331_s20 = scalar_lea.vmem %s4276_s4, %s2789_s18  ;;  %s643_s14 = scalar_lea.vmem %s4253_s12, %s3303_s15 }
  0x20   : > { %s4279_s3 = sld [smem:[#allocation3_spill]] }
  0x22   : > { %s3337_s24 = scalar_lea.vmem %s4277_s5, %s2966_s21  ;;  %s4278_s5 = sld [smem:[#allocation14_spill]] }
  0x26   : > { %p2797_p7 = scmp.ne.s32.totalorder %s4279_s3, 0 }
  0x28   : > { %s3369_s0 = scalar_lea.vmem %s4278_s5, %s2968_s28  ;;  %651 = sbr.rel (%p2797_p7) target bundleno = 49 (0x31), region = 76 }
  0x2d   : > { %v652_v0 = vld [vmem:[%s597_s27] sm:$0xff]  ;;  %vm655_vm0 = vcmask 523264   ;;  %v653_v1 = vld [vmem:[%s597_s27 + $0x8] sm:$0xff]  ;;  %v654_v2 = vld [vmem:[%s597_s27 + $0x10] sm:$0xff] }
  0x2e   : > { %656 = vst.msk [vmem:[#allocation2] sm:$0xff] %vm655_vm0, %v652_v0 }
  0x2f   : > { %657 = vst.msk [vmem:[#allocation2 + $0x8] sm:$0xff] %vm655_vm0, %v653_v1 }
  0x30   : > { %658 = vst.msk [vmem:[#allocation2 + $0x10] sm:$0xff] %vm655_vm0, %v654_v2 }
  0x31 PF: > { %vm664_vm1 = vcmask 523264   ;;  %v3189_v9 = vmov 64.0   ;;  %v2824_v31 = vld [vmem:[%s3325_s17 + $0x30] sm:$0xf]  ;;  %v2976_v32 = vld [vmem:[%s3325_s17 + $0x34] sm:$0xf0]  ;;  %s4280_s27 = scalar_lea.vmem %s4242_s1, %s3303_s15  ;;  %s4281_s18 = scalar_lea.vmem %s4243_s2, %s3303_s15 }
  0x32   : > { %3094 = vrcp.f32 %v3189_v9  ;;  %v2975_v33 = vld [vmem:[%s3325_s17 + $0x34] sm:$0xf]  ;;  %v2825_v34 = vor.u32 %v2976_v32, %v2824_v31  ;;  %v2826_v35 = vld [vmem:[%s3325_s17 + $0x38] sm:$0xf0]  ;;  %v2816_v37 = vld [vmem:[%s3325_s17 + $0x20] sm:$0xf]  ;;  %s4282_s22 = scalar_lea.vmem %s4247_s6, %s3303_s15  ;;  %s4283_s28 = scalar_lea.vmem %s4248_s7, %s3303_s15 }
  0x33   : > { %v2829_v36 = vor.u32 %v2975_v33, %v2826_v35  ;;  %v2974_v38 = vld [vmem:[%s3325_s17 + $0x24] sm:$0xf0]  ;;  %v2973_v39 = vld [vmem:[%s3325_s17 + $0x24] sm:$0xf]  ;;  %v2818_v41 = vld [vmem:[%s3325_s17 + $0x28] sm:$0xf0] }
  0x34   : > { %816 = vmatpush.bf16.msra.mxu0 %v2825_v34  ;;  %3005 = vmatpush.bf16.msra.mxu3 %v2825_v34  ;;  %v2817_v40 = vor.u32 %v2974_v38, %v2816_v37  ;;  %v2821_v42 = vor.u32 %v2973_v39, %v2818_v41  ;;  %v2808_v43 = vld [vmem:[%s3325_s17 + $0x10] sm:$0xf]  ;;  %v2972_v44 = vld [vmem:[%s3325_s17 + $0x14] sm:$0xf0]  ;;  %v2971_v45 = vld [vmem:[%s3325_s17 + $0x14] sm:$0xf] }
  0x35   : > { %v659_v3 = vld [vmem:[#allocation2] sm:$0xff]  ;;  %834 = vmatpush.bf16.msra.mxu1 %v2829_v36  ;;  %v2809_v46 = vor.u32 %v2972_v44, %v2808_v43  ;;  %v2810_v47 = vld [vmem:[%s3325_s17 + $0x18] sm:$0xf0]  ;;  %v2970_v52 = vld [vmem:[%s3325_s17 + $0x4] sm:$0xf0]  ;;  %s3190_s16 = smov 32  }
  0x36   : > { %v665_v5 = vsel %vm664_vm1, %v659_v3, 0.0  ;;  %v660_v7 = vld [vmem:[#allocation2 + $0x8] sm:$0xff]  ;;  %v2813_v48 = vor.u32 %v2971_v45, %v2810_v47  ;;  %v2800_v51 = vld [vmem:[%s3325_s17] sm:$0xf]  ;;  %v2969_v53 = vld [vmem:[%s3325_s17 + $0x4] sm:$0xf] }
  0x37   : > { %v661_v4 = vld [vmem:[#allocation2 + $0x10] sm:$0xff]  ;;  %666 = vadd.xlane.f32.xlu0 %v665_v5  ;;  %v668_v8 = vsel %vm664_vm1, %v660_v7, 0.0  ;;  %v2801_v54 = vor.u32 %v2970_v52, %v2800_v51  ;;  %v2802_v55 = vld [vmem:[%s3325_s17 + $0x8] sm:$0xf0]  ;;  %v760_v38 = vld [vmem:[%s3331_s20] sm:$0x3] }
  0x38   : > { %v671_v6 = vsel %vm664_vm1, %v661_v4, 0.0  ;;  %v3095_v10 = vpop.eup %3094  ;;  %817 = vmatpush.bf16.msra.mxu0 %v2817_v40  ;;  %3006 = vmatpush.bf16.msra.mxu3 %v2817_v40  ;;  %v2805_v57 = vor.u32 %v2969_v53, %v2802_v55  ;;  %v762_v40 = vperm.slane %v760_v38, 0  ;;  %v763_v43 = vperm.slane %v760_v38, 1  ;;  %s3191_s20 = smov 64   ;;  %s3192_s25 = smov 96  }
  0x39   : > { %672 = vadd.xlane.f32.xlu1 %v671_v6  ;;  %v675_v11 = vmul.f32 64.0, %v3095_v10  ;;  %vm679_vm2 = vweird.f32 %v3095_v10  ;;  %835 = vmatpush.bf16.msra.mxu1 %v2821_v42  ;;  %vm891_vm12 = vcmask 1047556   ;;  %vm1537_vm13 = vcmask 261120   ;;  %s4284_s15 = sld [smem:[#allocation3_spill]] }
  0x3a   : > { %vm1721_vm14 = vcmask 1043456   ;;  %vm1625_vm0 = vcmask 195584  }
  0x3b   : > { %v676_v12 = vsub.f32 1.0, %v675_v11 }
  0x3c   : > { %818 = vmatpush.bf16.msra.mxu0 %v2809_v46  ;;  %3007 = vmatpush.bf16.msra.mxu3 %v2809_v46 }
  0x3d   : > { %v677_v13 = vmul.f32 %v3095_v10, %v676_v12  ;;  %836 = vmatpush.bf16.msra.mxu1 %v2813_v48 }
  0x3f   : > { %669 = vadd.xlane.f32.xlu0 %v668_v8  ;;  %v678_v14 = vadd.f32 %v3095_v10, %v677_v13  ;;  %p2960_p8 = scmp.ne.s32.totalorder %s4284_s15, 1 }
  0x40   : > { %819 = vmatpush.bf16.msra.mxu0 %v2801_v54  ;;  %3008 = vmatpush.bf16.msra.mxu3 %v2801_v54  ;;  %s4286_s4 = sld [smem:[#allocation15_spill]] (!%p2960_p8) }
  0x41   : > { %v3375_v15 = vsel %vm679_vm2, %v3095_v10, %v678_v14  ;;  %837 = vmatpush.bf16.msra.mxu1 %v2805_v57  ;;  %v3088_v14 = vld [vmem:[%s4280_s27] ss:$0 sm:$0xff] }
  0xaa   : > { %v667_v16 = vpop.xlane.xlu0 %666 }
  0xab   : > { %v681_v17 = vmul.f32 %v3375_v15, %v667_v16 }
  0xac   : > { %v673_v20 = vpop.xlane.xlu1 %672 }
  0xad   : > { %v3378_v18 = vsub.f32 %v659_v3, %v681_v17  ;;  %v683_v24 = vmul.f32 %v3375_v15, %v673_v20 }
  0xaf   : > { %v687_v19 = vmul.f32 %v3378_v18, %v3378_v18  ;;  %v3387_v26 = vsub.f32 %v661_v4, %v683_v24 }
  0xb1   : > { %v690_v21 = vsel %vm664_vm1, %v687_v19, 0.0  ;;  %v689_v29 = vmul.f32 %v3387_v26, %v3387_v26 }
  0xb2   : > { %691 = vadd.xlane.f32.xlu1 %v690_v21  ;;  %v670_v22 = vpop.xlane.xlu0 %669 }
  0xb3   : > { %v682_v23 = vmul.f32 %v3375_v15, %v670_v22  ;;  %v696_v30 = vsel %vm664_vm1, %v689_v29, 0.0 }
  0xb5   : > { %v3385_v25 = vsub.f32 %v660_v7, %v682_v23  ;;  %v3089_v23 = vld [vmem:[%s4281_s18] ss:$0 sm:$0xff] }
  0xb7   : > { %v688_v27 = vmul.f32 %v3385_v25, %v3385_v25 }
  0xb9   : > { %v693_v28 = vsel %vm664_vm1, %v688_v27, 0.0 }
  0xba   : > { %694 = vadd.xlane.f32.xlu2 %v693_v28 }
  0xc2   : > { %697 = vadd.xlane.f32.xlu2 %v696_v30 }
 0x125   : > { %v692_v49 = vpop.xlane.xlu1 %691 }
 0x126   : > { %v699_v50 = vmul.f32 %v692_v49, %v3375_v15 }
 0x128   : > { %v702_v56 = vadd.f32 1e-06, %v699_v50 }
 0x12a   : > { %3096 = vrsqrt.f32 %v702_v56  ;;  %vm711_vm4 = vweird.f32 %v702_v56 }
 0x12d   : > { %v695_v58 = vpop.xlane.xlu2 %694 }
 0x12e   : > { %v700_v59 = vmul.f32 %v695_v58, %v3375_v15 }
 0x130   : > { %v3097_v60 = vpop.eup %3096  ;;  %v703_v61 = vadd.f32 1e-06, %v700_v59 }
 0x131   : > { %v706_v62 = vmul.f32 %v3097_v60, %v702_v56  ;;  %vm712_vm3 = vweird.f32 %v3097_v60  ;;  %v3193_v56 = vmov 1983009808  }
 0x132   : > { %3098 = vrsqrt.f32 %v703_v61  ;;  %vm713_vm5 = vmor %vm711_vm4, %vm712_vm3  ;;  %vm721_vm7 = vweird.f32 %v703_v61  ;;  %v896_v57 = vunpack.c.l.s4 %v3193_v56 }
 0x133   : > { %v707_v63 = vmul.f32 %v3097_v60, %v706_v62 }
 0x135   : > { %v708_v0 = vmul.f32 0.5, %v707_v63  ;;  %v698_v1 = vpop.xlane.xlu2 %697 }
 0x136   : > { %v701_v2 = vmul.f32 %v698_v1, %v3375_v15 }
 0x137   : > { %v709_v3 = vsub.f32 1.5, %v708_v0 }
 0x138   : > { %v3099_v4 = vpop.eup %3098  ;;  %v704_v5 = vadd.f32 1e-06, %v701_v2 }
 0x139   : > { %v710_v6 = vmul.f32 %v3097_v60, %v709_v3  ;;  %v716_v7 = vmul.f32 %v3099_v4, %v703_v61  ;;  %vm722_vm6 = vweird.f32 %v3099_v4 }
 0x13a   : > { %3100 = vrsqrt.f32 %v704_v5  ;;  %vm723_vm8 = vmor %vm721_vm7, %vm722_vm6  ;;  %vm731_vm10 = vweird.f32 %v704_v5 }
 0x13b   : > { %v717_v8 = vmul.f32 %v3099_v4, %v716_v7  ;;  %v714_v9 = vsel %vm713_vm5, %v3097_v60, %v710_v6  ;;  %v3447_v60 = vunpack.c.0.s8 %v896_v57 }
 0x13c   : > { %v735_v13 = vmul.f32 %v714_v9, %v3378_v18 }
 0x13d   : > { %v718_v10 = vmul.f32 0.5, %v717_v8 }
 0x13e   : > { %v741_v22 = vmul.f32 %v3088_v14, %v735_v13 }
 0x13f   : > { %v719_v11 = vsub.f32 1.5, %v718_v10 }
 0x140   : > { %v3101_v12 = vpop.eup %3100  ;;  %v747_v28 = vadd.f32 %v3089_v23, %v741_v22 }
 0x141   : > { %v720_v16 = vmul.f32 %v3099_v4, %v719_v11  ;;  %v726_v17 = vmul.f32 %v3101_v12, %v704_v5  ;;  %vm732_vm9 = vweird.f32 %v3101_v12 }
 0x142   : > { %vm733_vm11 = vmor %vm731_vm10, %vm732_vm9 }
 0x143   : > { %v724_v19 = vsel %vm723_vm8, %v3099_v4, %v720_v16  ;;  %v727_v20 = vmul.f32 %v3101_v12, %v726_v17 }
 0x144   : > { %v736_v21 = vmul.f32 %v724_v19, %v3385_v25 }
 0x145   : > { %v728_v18 = vmul.f32 0.5, %v727_v20  ;;  %v3194_v20 = vmov 1934713408  }
 0x146   : > { %v742_v24 = vmul.f32 %v3088_v14, %v736_v21  ;;  %v940_v21 = vunpack.c.l.s4 %v3194_v20 }
 0x147   : > { %v729_v27 = vsub.f32 1.5, %v728_v18 }
 0x148   : > { %v748_v29 = vadd.f32 %v3089_v23, %v742_v24  ;;  %v3487_v38 = vunpack.c.0.s8 %v940_v21 }
 0x149   : > { %v730_v30 = vmul.f32 %v3101_v12, %v729_v27 }
 0x14a   : > { %v750_v31 = vpack.c.bf16 %v748_v29, %v747_v28 }
 0x14b   : > { %v734_v32 = vsel %vm733_vm11, %v3101_v12, %v730_v30 }
 0x14c   : > { %2830 = vmatmul.msk.bf16.vlgmr.msra.gmra.mxu0 %vm664_vm1, %v750_v31  ;;  %2832 = vmatmul.msk.bf16.vlgmr.msra.gmra.mxu1 %vm664_vm1, %v750_v31  ;;  %v737_v25 = vmul.f32 %v734_v32, %v3387_v26 }
 0x14e   : > { %v743_v33 = vmul.f32 %v3088_v14, %v737_v25 }
 0x150   : > { %v749_v34 = vadd.f32 %v3089_v23, %v743_v33 }
 0x152   : > { %v751_v35 = vpack.c.bf16 %v749_v34, %v749_v34 }
 0x154   : > { %2831 = vmatmul.msk.bf16.vlgmr.msra.gmra.mxu3 %vm664_vm1, %v751_v35 }
 0x15c   : > { %2833 = vmatmul.msk.bf16.gmra.mxu1 %vm664_vm1, %v751_v35 }
 0x1c9   : > { %v839_v36 = vpop.f32.mrf.mxu1  ;;  %v821_v37 = vpop.f32.mrf.mxu0 }
 0x1ca   : > { %v3432_v42 = vadd.f32 %v821_v37, %v762_v40  ;;  %v840_v54 = vadd.f32 %v839_v36, %v763_v43 }
 0x1cc   : > { %v915_v58 = vrot.slane %v840_v54, 4  ;;  %v3451_v0 = vperm.slane %v840_v54, %v3447_v60  ;;  %v893_v9 = vrot.slane %v3432_v42, 4 }
 0x1ce   : > { %v916_v62 = vsel %vm891_vm12, 0.0, %v915_v58  ;;  %v961_v7 = vrot.slane %v3451_v0, 4 }
 0x1cf   : > { %v3455_v2 = vperm.slane %v916_v62, %v3447_v60 }
 0x1d1   : > { %v841_v39 = vpop.f32.mrf.mxu1  ;;  %v823_v45 = vpop.f32.mrf.mxu0  ;;  %v973_v10 = vrot.slane %v3455_v2, 4 }
 0x1d2   : > { %v3440_v48 = vadd.f32 %v823_v45, %v762_v40  ;;  %v842_v51 = vadd.f32 %v841_v39, %v763_v43 }
 0x1d4   : > { %v3073_v52 = vpack.i.bf16 %v3440_v48, %v3432_v42  ;;  %v3068_v55 = vpack.i.bf16 %v842_v51, %v840_v54  ;;  %v1023_v61 = vrot.slane %v842_v51, 4  ;;  %v3458_v3 = vperm.slane %v842_v51, %v3447_v60 }
 0x1d5   : > { %v1001_v14 = vrot.slane %v3440_v48, 4 }
 0x1d6   : > { %v1024_v1 = vsel %vm891_vm12, 0.0, %v1023_v61  ;;  %v1069_v11 = vrot.slane %v3458_v3, 4 }
 0x1d7   : > { %v826_v41 = vpop.f32.mrf.mxu3  ;;  %v3462_v5 = vperm.slane %v1024_v1, %v3447_v60 }
 0x1d8   : > { %v3434_v44 = vadd.f32 %v826_v41, %v762_v40 }
 0x1d9   : > { %v844_v26 = vpop.f32.mrf.mxu1  ;;  %v1081_v22 = vrot.slane %v3462_v5, 4 }
 0x1da   : > { %v845_v46 = vadd.f32 %v844_v26, %v763_v43  ;;  %873 = vrot.lane.b32.xlu2 %v3434_v44, %s3190_s16  ;;  %v3058_v47 = vpack.i.bf16 %v3432_v42, %v3434_v44  ;;  %v1109_v19 = vrot.slane %v3434_v44, 4 }
 0x1dc   : > { %3059 = vrot.lane.b32.xlu1 %v3058_v47, %s3191_s20  ;;  %v3063_v49 = vpack.i.bf16 %v3434_v44, %v845_v46  ;;  %v1131_v63 = vrot.slane %v845_v46, 4  ;;  %v1136_v6 = vperm.slane %v845_v46, %v3447_v60 }
 0x1de   : > { %3064 = vrot.lane.b32.xlu0 %v3063_v49, %s3192_s25  ;;  %v1132_v4 = vsel %vm891_vm12, 0.0, %v1131_v63  ;;  %v1177_v23 = vrot.slane %v1136_v6, 4 }
 0x1df   : > { %v828_v50 = vpop.f32.mrf.mxu3  ;;  %v3472_v12 = vperm.slane %v1132_v4, %v3447_v60 }
 0x1e1   : > { %v846_v53 = vpop.f32.mrf.mxu1  ;;  %v1189_v32 = vrot.slane %v3472_v12, 4 }
 0x1e2   : > { %3074 = vrot.lane.b32.xlu2 %v3073_v52, %s3192_s25 }
 0x1e4   : > { %862 = vrot.lane.b32.xlu1 %v3440_v48, %s3191_s20 }
 0x1e6   : > { %3069 = vrot.lane.b32.xlu0 %v3068_v55, %s3192_s25 }
 0x1ee   : > { %3079 = vrot.lane.b32.xlu0 %v3073_v52, %s3190_s16 }
 0x234   : > { %v874_v59 = vpop.permute.xlu2 %873 }
 0x235   : > { %v1119_v35 = vrot.slane %v874_v59, 4 }
 0x23c   : > { %v3466_v8 = vpop.permute.xlu2 %3074 }
 0x23d   : > { %v3077_v18 = vunpack.i.h.bf16 %v3466_v8  ;;  %v3076_v24 = vunpack.i.l.bf16 %v3466_v8 }
 0x23f   : > { %v3491_v39 = vrot.slane %v3077_v18, 4  ;;  %v3495_v40 = vrot.slane %v3076_v24, 4 }
 0x24e   : > { %v3060_v13 = vpop.permute.xlu1 %3059 }
 0x24f   : > { %v3062_v16 = vunpack.i.h.bf16 %v3060_v13  ;;  %v3061_v17 = vunpack.i.l.bf16 %v3060_v13 }
 0x250   : > { %v3065_v27 = vpop.permute.xlu0 %3064 }
 0x251   : > { %v890_v28 = vrot.slane %v3062_v16, 4  ;;  %v894_v29 = vsel %vm891_vm12, %v3062_v16, %v893_v9  ;;  %v1107_v30 = vrot.slane %v3061_v17, 4  ;;  %v1110_v31 = vsel %vm891_vm12, %v3061_v17, %v1109_v19 }
 0x252   : > { %v1118_v25 = vperm.slane %v1110_v31, %v3447_v60  ;;  %v3067_v33 = vunpack.i.h.bf16 %v3065_v27  ;;  %v3066_v34 = vunpack.i.l.bf16 %v3065_v27  ;;  %v3498_v41 = vperm.slane %v894_v29, %v3447_v60 }
 0x253   : > { %v892_v36 = vsel %vm891_vm12, %v890_v28, %v3432_v42  ;;  %v1108_v37 = vsel %vm891_vm12, %v1107_v30, %v3434_v44 }
 0x254   : > { %v1114_v43 = vperm.slane %v1108_v37, %v3447_v60  ;;  %v1121_v45 = vrot.slane %v3067_v33, 4  ;;  %v1120_v42 = vsel %vm891_vm12, %v1119_v35, %v3067_v33  ;;  %v1141_v26 = vrot.slane %v3066_v34, 4 }
 0x255   : > { %v1146_v44 = vperm.slane %v3066_v34, %v3447_v60  ;;  %v3504_v46 = vperm.slane %v892_v36, %v3447_v60  ;;  %v1165_v49 = vrot.slane %v1118_v25, 4  ;;  %v1126_v50 = vperm.slane %v1120_v42, %v3447_v60 }
 0x256   : > { %v1153_v47 = vrot.slane %v1114_v43, 4  ;;  %v863_v51 = vpop.permute.xlu1 %862  ;;  %v1122_v52 = vsel %vm891_vm12, %v874_v59, %v1121_v45  ;;  %v1142_v53 = vsel %vm891_vm12, 0.0, %v1141_v26  ;;  %v949_v37 = vrot.slane %v3498_v41, 4 }
 0x257   : > { %v1175_v54 = vrot.slane %v1146_v44, 4  ;;  %v1178_v55 = vsel %vm891_vm12, %v1146_v44, %v1177_v23  ;;  %v1130_v56 = vperm.slane %v1122_v52, %v3447_v60  ;;  %v1150_v57 = vperm.slane %v1142_v53, %v3447_v60 }
 0x258   : > { %v1151_v58 = vrot.slane %v1126_v50, 4  ;;  %v1154_v61 = vsel %vm891_vm12, %v1126_v50, %v1153_v47  ;;  %v3070_v62 = vpop.permute.xlu0 %3069  ;;  %v1186_v4 = vperm.slane %v1178_v55, %v3487_v38  ;;  %v999_v59 = vrot.slane %v863_v51, 4 }
 0x259   : > { %v1162_v63 = vperm.slane %v1154_v61, %v3487_v38  ;;  %v1176_v1 = vsel %vm891_vm12, %v1175_v54, %v1136_v6  ;;  %v1163_v13 = vrot.slane %v1130_v56, 4  ;;  %v1166_v16 = vsel %vm891_vm12, %v1130_v56, %v1165_v49 }
 0x25a   : > { %v1152_v9 = vsel %vm891_vm12, %v1151_v58, %v1114_v43  ;;  %v1182_v17 = vperm.slane %v1176_v1, %v3487_v38  ;;  %v1174_v20 = vperm.slane %v1166_v16, %v3487_v38  ;;  %v1187_v21 = vrot.slane %v1150_v57, 4 }
 0x25b   : > { %v1158_v19 = vperm.slane %v1152_v9, %v3487_v38  ;;  %v1190_v23 = vsel %vm891_vm12, %v1150_v57, %v1189_v32  ;;  %v1164_v27 = vsel %vm891_vm12, %v1163_v13, %v1118_v25  ;;  %v1203_v29 = vrot.slane %v1186_v4, 4 }
 0x25c   : > { %v1198_v6 = vperm.slane %v1190_v23, %v3487_v38  ;;  %v1199_v28 = vrot.slane %v1182_v17, 4  ;;  %v3525_v30 = vperm.slane %v1164_v27, %v3487_v38  ;;  %v1188_v31 = vsel %vm891_vm12, %v1187_v21, %v3472_v12 }
 0x25d   : > { %v1201_v33 = vrot.slane %v1158_v19, 4  ;;  %v1205_v34 = vrot.slane %v1162_v63, 4  ;;  %v3530_v35 = vperm.slane %v1188_v31, %v3487_v38  ;;  %v3536_v32 = vsel %vm891_vm12, %v1203_v29, %v1162_v63 }
 0x25e   : > { %v3533_v36 = vsel %vm891_vm12, %v1199_v28, %v1158_v19  ;;  %v1211_v25 = vrot.slane %v1198_v6, 4  ;;  %v1213_v12 = vrot.slane %v1174_v20, 4  ;;  %v937_v42 = vrot.slane %v3504_v46, 4 }
 0x25f   : > { %v3540_v43 = vsel %vm891_vm12, %v1182_v17, %v1201_v33  ;;  %v3543_v45 = vsel %vm891_vm12, %v1186_v4, %v1205_v34  ;;  %v1207_v26 = vrot.slane %v3530_v35, 4  ;;  %v1209_v44 = vrot.slane %v3525_v30, 4 }
 0x260   : > { %v3549_v47 = vsel %vm891_vm12, %v1211_v25, %v1174_v20  ;;  %v3552_v49 = vsel %vm891_vm12, %v1198_v6, %v1213_v12  ;;  %v1407_v50 = vrot.slane %v3536_v32, 4  ;;  %v1409_v52 = vrot.slane %v3533_v36, 4  ;;  %v3080_v58 = vpop.permute.xlu0 %3079 }
 0x261   : > { %v1421_v53 = vrot.slane %v3540_v43, 4  ;;  %v1419_v54 = vrot.slane %v3543_v45, 4  ;;  %v1000_v55 = vsel %vm891_vm12, %v999_v59, %v3440_v48  ;;  %v1002_v56 = vsel %vm891_vm12, %v863_v51, %v1001_v14 }
 0x262   : > { %v3072_v57 = vunpack.i.h.bf16 %v3070_v62  ;;  %v1431_v61 = vrot.slane %v3549_v47, 4  ;;  %v3565_v63 = vperm.slane %v1000_v55, %v3447_v60  ;;  %v3568_v1 = vperm.slane %v1002_v56, %v3447_v60 }
 0x263   : > { %v3071_v4 = vunpack.i.l.bf16 %v3070_v62  ;;  %v3572_v9 = vsel %vm891_vm12, %v3543_v45, %v1421_v53  ;;  %v1443_v59 = vrot.slane %v3552_v49, 4  ;;  %v3082_v16 = vunpack.i.h.bf16 %v3080_v58 }
 0x264   : > { %v1033_v48 = vrot.slane %v3072_v57, 4  ;;  %v1038_v14 = vperm.slane %v3072_v57, %v3447_v60  ;;  %v3081_v17 = vunpack.i.l.bf16 %v3080_v58  ;;  %v1045_v19 = vrot.slane %v3565_v63, 4 }
 0x265   : > { %v925_v51 = vrot.slane %v3071_v4, 4  ;;  %v930_v13 = vperm.slane %v3071_v4, %v3447_v60  ;;  %v1057_v23 = vrot.slane %v3568_v1, 4  ;;  %v1011_v4 = vrot.slane %v3082_v16, 4 }
 0x266   : > { %v1034_v20 = vsel %vm891_vm12, 0.0, %v1033_v48  ;;  %v1067_v21 = vrot.slane %v1038_v14, 4  ;;  %v1070_v62 = vsel %vm891_vm12, %v1038_v14, %v1069_v11  ;;  %v903_v53 = vrot.slane %v3081_v17, 4 }
 0x267   : > { %v1042_v27 = vperm.slane %v1034_v20, %v3447_v60  ;;  %v926_v6 = vsel %vm891_vm12, 0.0, %v925_v51  ;;  %v959_v28 = vrot.slane %v930_v13, 4  ;;  %v3588_v31 = vperm.slane %v1070_v62, %v3487_v38 }
 0x268   : > { %v1068_v29 = vsel %vm891_vm12, %v1067_v21, %v3458_v3  ;;  %v934_v33 = vperm.slane %v926_v6, %v3447_v60  ;;  %v962_v34 = vsel %vm891_vm12, %v930_v13, %v961_v7 }
 0x269   : > { %v3595_v11 = vperm.slane %v1068_v29, %v3487_v38  ;;  %v1079_v25 = vrot.slane %v1042_v27, 4  ;;  %v1082_v12 = vsel %vm891_vm12, %v1042_v27, %v1081_v22  ;;  %v960_v55 = vsel %vm891_vm12, %v959_v28, %v3451_v0 }
 0x26a   : > { %v3601_v3 = vperm.slane %v1082_v12, %v3487_v38  ;;  %v970_v56 = vperm.slane %v962_v34, %v3487_v38  ;;  %v971_v57 = vrot.slane %v934_v33, 4  ;;  %v3609_v58 = vperm.slane %v960_v55, %v3487_v38 }
 0x26b   : > { %v1080_v7 = vsel %vm891_vm12, %v1079_v25, %v3462_v5  ;;  %v974_v22 = vsel %vm891_vm12, %v934_v33, %v973_v10  ;;  %v1095_v14 = vrot.slane %v3588_v31, 4  ;;  %v1091_v5 = vrot.slane %v3595_v11, 4 }
 0x26c   : > { %v3615_v48 = vperm.slane %v1080_v7, %v3487_v38  ;;  %v972_v0 = vsel %vm891_vm12, %v971_v57, %v3455_v2  ;;  %v982_v51 = vperm.slane %v974_v22, %v3487_v38  ;;  %v1103_v13 = vrot.slane %v3601_v3, 4 }
 0x26d   : > { %v3624_v20 = vperm.slane %v972_v0, %v3487_v38  ;;  %v904_v10 = vsel %vm891_vm12, %v903_v53, %v3076_v24  ;;  %v983_v21 = vrot.slane %v3609_v58, 4  ;;  %v987_v62 = vrot.slane %v970_v56, 4 }
 0x26e   : > { %v906_v27 = vsel %vm891_vm12, %v3081_v17, %v3495_v40  ;;  %v910_v2 = vperm.slane %v904_v10, %v3447_v60  ;;  %v1099_v6 = vrot.slane %v3615_v48, 4  ;;  %v1012_v29 = vsel %vm891_vm12, %v1011_v4, %v3077_v18 }
 0x26f   : > { %v914_v28 = vperm.slane %v906_v27, %v3447_v60  ;;  %v1014_v33 = vsel %vm891_vm12, %v3082_v16, %v3491_v39  ;;  %v995_v24 = vrot.slane %v982_v51, 4  ;;  %v1018_v40 = vperm.slane %v1012_v29, %v3447_v60 }
 0x270   : > { %v935_v34 = vrot.slane %v910_v2, 4  ;;  %v938_v25 = vsel %vm891_vm12, %v910_v2, %v937_v42  ;;  %v1022_v18 = vperm.slane %v1014_v33, %v3447_v60  ;;  %v991_v42 = vrot.slane %v3624_v20, 4 }
 0x271   : > { %v946_v17 = vperm.slane %v938_v25, %v3487_v38  ;;  %v947_v12 = vrot.slane %v914_v28, 4  ;;  %v950_v8 = vsel %vm891_vm12, %v914_v28, %v949_v37  ;;  %v1043_v53 = vrot.slane %v1018_v40, 4 }
 0x272   : > { %v936_v39 = vsel %vm891_vm12, %v935_v34, %v3504_v46  ;;  %v958_v16 = vperm.slane %v950_v8, %v3487_v38  ;;  %v1046_v55 = vsel %vm891_vm12, %v1018_v40, %v1045_v19  ;;  %v1208_v19 = vsel %vm891_vm12, %v1207_v26, %v3525_v30 }
 0x273   : > { %v3655_v57 = vperm.slane %v936_v39, %v3487_v38  ;;  %v948_v7 = vsel %vm891_vm12, %v947_v12, %v3498_v41  ;;  %v989_v22 = vrot.slane %v946_v17, 4  ;;  %v1044_v46 = vsel %vm891_vm12, %v1043_v53, %v3565_v63 }
 0x274   : > { %v3660_v37 = vperm.slane %v948_v7, %v3487_v38  ;;  %v997_v4 = vrot.slane %v958_v16, 4  ;;  %v3669_v0 = vsel %vm891_vm12, %v987_v62, %v946_v17  ;;  %v3672_v10 = vsel %vm891_vm12, %v995_v24, %v958_v16 }
 0x275   : > { %v3675_v41 = vperm.slane %v1044_v46, %v3487_v38  ;;  %v1054_v27 = vperm.slane %v1046_v55, %v3487_v38  ;;  %v985_v2 = vrot.slane %v3655_v57, 4  ;;  %v3680_v63 = vsel %vm891_vm12, %v970_v56, %v989_v22 }
 0x276   : > { %v3684_v28 = vsel %vm891_vm12, %v991_v42, %v3660_v37  ;;  %v1055_v26 = vrot.slane %v1022_v18, 4  ;;  %v993_v62 = vrot.slane %v3660_v37, 4  ;;  %v3688_v29 = vsel %vm891_vm12, %v982_v51, %v997_v4 }
 0x277   : > { %v1058_v33 = vsel %vm891_vm12, %v1022_v18, %v1057_v23  ;;  %v1097_v24 = vrot.slane %v1054_v27, 4  ;;  %v1093_v25 = vrot.slane %v3675_v41, 4  ;;  %v3698_v40 = vsel %vm891_vm12, %v1095_v14, %v1054_v27 }
 0x278   : > { %v1056_v34 = vsel %vm891_vm12, %v1055_v26, %v3568_v1  ;;  %v1066_v56 = vperm.slane %v1058_v33, %v3487_v38  ;;  %v1215_v12 = vrot.slane %v3669_v0, 4  ;;  %v1239_v23 = vrot.slane %v3672_v10, 4 }
 0x279   : > { %v1062_v17 = vperm.slane %v1056_v34, %v3487_v38  ;;  %v3703_v51 = vsel %vm891_vm12, %v3588_v31, %v1097_v24  ;;  %v1241_v18 = vrot.slane %v3684_v28, 4  ;;  %v1210_v14 = vsel %vm891_vm12, %v3530_v35, %v1209_v44 }
 0x27a   : > { %v3708_v8 = vsel %vm891_vm12, %v1103_v13, %v1066_v56  ;;  %v1105_v1 = vrot.slane %v1066_v56, 4  ;;  %v1251_v31 = vrot.slane %v3688_v29, 4  ;;  %v1311_v16 = vrot.slane %v3698_v40, 4 }
 0x27b   : > { %v3716_v39 = vsel %vm891_vm12, %v1099_v6, %v1062_v17  ;;  %v1408_v13 = vsel %vm891_vm12, %v1407_v50, %v3533_v36  ;;  %v1101_v53 = vrot.slane %v1062_v17, 4  ;;  %v1420_v35 = vsel %vm891_vm12, %v1419_v54, %v3540_v43 }
 0x27c   : > { %v3726_v55 = vsel %vm891_vm12, %v3601_v3, %v1105_v1  ;;  %v3729_v30 = vperm.slane %v1408_v13, %v3447_v60  ;;  %v1335_v44 = vrot.slane %v3708_v8, 4  ;;  %v3737_v6 = vperm.slane %v1420_v35, %v3447_v60 }
 0x27d   : > { %v1432_v50 = vsel %vm891_vm12, %v1431_v61, %v1208_v19  ;;  %v1444_v3 = vsel %vm891_vm12, %v1443_v59, %v1210_v14  ;;  %v1337_v42 = vrot.slane %v3716_v39, 4  ;;  %v1445_v45 = vrot.slane %v1210_v14, 4 }
 0x27e   : > { %v3747_v7 = vperm.slane %v1432_v50, %v3447_v60  ;;  %v1457_v43 = vrot.slane %v3729_v30, 4  ;;  %v1347_v54 = vrot.slane %v3726_v55, 4  ;;  %v1410_v22 = vsel %vm891_vm12, %v3536_v32, %v1409_v52 }
 0x27f   : > { %v1430_v61 = vperm.slane %v3572_v9, %v3447_v60  ;;  %v1433_v37 = vrot.slane %v1208_v19, 4  ;;  %v3758_v59 = vperm.slane %v1444_v3, %v3447_v60  ;;  %v1418_v27 = vperm.slane %v1410_v22, %v3447_v60 }
 0x280   : > { %v1458_v4 = vsel %vm891_vm12, %v3737_v6, %v1457_v43  ;;  %v1475_v46 = vrot.slane %v3747_v7, 4  ;;  %v1446_v32 = vsel %vm891_vm12, %v3552_v49, %v1445_v45  ;;  %v3784_v1 = vsel %vm891_vm12, %v3609_v58, %v985_v2 }
 0x281   : > { %v1466_v26 = vperm.slane %v1458_v4, %v3487_v38  ;;  %v1434_v36 = vsel %vm891_vm12, %v3549_v47, %v1433_v37  ;;  %v1467_v52 = vrot.slane %v1430_v61, 4  ;;  %v1454_v33 = vperm.slane %v1446_v32, %v3447_v60 }
 0x282   : > { %v1476_v9 = vsel %vm891_vm12, %v3758_v59, %v1475_v46  ;;  %v1442_v19 = vperm.slane %v1434_v36, %v3447_v60  ;;  %v3779_v47 = vsel %vm891_vm12, %v983_v21, %v3655_v57  ;;  %v3788_v14 = vsel %vm891_vm12, %v3624_v20, %v993_v62 }
 0x283   : > { %v1484_v24 = vperm.slane %v1476_v9, %v3487_v38  ;;  %v1497_v34 = vrot.slane %v1466_v26, 4  ;;  %v1468_v56 = vsel %vm891_vm12, %v1467_v52, %v1418_v27  ;;  %v1485_v17 = vrot.slane %v1454_v33, 4 }
 0x284   : > { %v1472_v49 = vperm.slane %v1468_v56, %v3487_v38  ;;  %v3795_v21 = vsel %vm891_vm12, %v1091_v5, %v3675_v41  ;;  %v3799_v57 = vsel %vm891_vm12, %v3595_v11, %v1093_v25  ;;  %v3804_v20 = vsel %vm891_vm12, %v3615_v48, %v1101_v53 }
 0x285   : > { %v1498_v13 = vsel %vm891_vm12, %v1484_v24, %v1497_v34  ;;  %v1495_v35 = vrot.slane %v1484_v24, 4  ;;  %v1486_v2 = vsel %vm891_vm12, %v1485_v17, %v1442_v19  ;;  %v1216_v5 = vsel %vm891_vm12, %v1215_v12, %v3779_v47 }
 0x286   : > { %v1514_v58 = vpack.c.bf16 %v1498_v13, %v1498_v13  ;;  %v1501_v50 = vrot.slane %v1472_v49, 4  ;;  %v1490_v3 = vperm.slane %v1486_v2, %v3487_v38  ;;  %v1227_v41 = vrot.slane %v3680_v63, 4 }
 0x287   : > { %v1496_v62 = vsel %vm891_vm12, %v1495_v35, %v1466_v26  ;;  %v3812_v25 = vperm.slane %v1216_v5, %v3447_v60  ;;  %v1229_v43 = vrot.slane %v3784_v1, 4  ;;  %v1240_v12 = vsel %vm891_vm12, %v1239_v23, %v3684_v28 }
 0x288   : > { %v1581_v45 = vunpack.c.l.b16 %v1514_v58  ;;  %v1511_v11 = vpack.c.bf16 %v1496_v62, %v1496_v62  ;;  %v1502_v22 = vsel %vm891_vm12, %v1490_v3, %v1501_v50  ;;  %v1499_v48 = vrot.slane %v1490_v3, 4 }
 0x289   : > { %v1228_v53 = vsel %vm891_vm12, %v1227_v41, %v3784_v1  ;;  %v1520_v4 = vpack.c.bf16 %v1502_v22, %v1502_v22  ;;  %v3827_v26 = vperm.slane %v1240_v12, %v3447_v60  ;;  %v1252_v36 = vsel %vm891_vm12, %v1251_v31, %v3788_v14 }
 0x28a   : > { %v1583_v61 = vpack.c.b16 %v1581_v45, %v1581_v45  ;;  %v1534_v37 = vunpack.c.l.b16 %v1511_v11  ;;  %v3823_v46 = vperm.slane %v1228_v53, %v3447_v60  ;;  %v1500_v27 = vsel %vm891_vm12, %v1499_v48, %v1472_v49 }
 0x28b   : > { %v1253_v32 = vrot.slane %v3788_v14, 4  ;;  %v1756_v9 = vunpack.c.l.b16 %v1520_v4  ;;  %v1517_v19 = vpack.c.bf16 %v1500_v27, %v1500_v27  ;;  %v3836_v33 = vperm.slane %v1252_v36, %v3447_v60 }
 0x28c   : > { %v1594_v23 = vsel %vm1537_vm13, %v1583_v61, 0  ;;  %v1536_v52 = vpack.c.b16 %v1534_v37, %v1534_v37  ;;  %v1265_v24 = vrot.slane %v3812_v25, 4  ;;  %v1283_v34 = vrot.slane %v3827_v26, 4 }
 0x28d   : > { %1602 = vmatpush.bf16.xpose.msrb.mxu3 %v1594_v23  ;;  %v1312_v31 = vsel %vm891_vm12, %v1311_v16, %v3795_v21  ;;  %v1758_v49 = vpack.c.b16 %v1756_v9, %v1756_v9  ;;  %v1711_v17 = vunpack.c.l.b16 %v1517_v19  ;;  %v1323_v35 = vrot.slane %v3703_v51, 4 }
 0x28e   : > { %v1548_v56 = vsel %vm1537_vm13, %v1536_v52, 0  ;;  %v3846_v1 = vperm.slane %v1312_v31, %v3447_v60  ;;  %v1266_v14 = vsel %vm891_vm12, %v3823_v46, %v1265_v24  ;;  %v1284_v13 = vsel %vm891_vm12, %v3836_v33, %v1283_v34 }
 0x28f   : > { %1556 = vmatpush.bf16.xpose.msra.mxu2 %v1548_v56  ;;  %v1325_v58 = vrot.slane %v3799_v57, 4  ;;  %v1767_v16 = vsel %vm1721_vm14, %v1758_v49, 0  ;;  %v1713_v2 = vpack.c.b16 %v1711_v17, %v1711_v17  ;;  %v1274_v50 = vperm.slane %v1266_v14, %v3487_v38 }
 0x290   : > { %v1292_v62 = vperm.slane %v1284_v13, %v3487_v38  ;;  %1775 = vmatpush.bf16.msrb.mxu1 %v1767_v16  ;;  %v1324_v3 = vsel %vm891_vm12, %v1323_v35, %v3799_v57  ;;  %v1336_v5 = vsel %vm891_vm12, %v1335_v44, %v3716_v39  ;;  %v1348_v41 = vsel %vm891_vm12, %v1347_v54, %v3804_v20 }
 0x291   : > { %v1349_v45 = vrot.slane %v3804_v20, 4  ;;  %v1723_v11 = vsel %vm1721_vm14, %v1713_v2, 0  ;;  %v3870_v48 = vperm.slane %v1324_v3, %v3447_v60  ;;  %v3873_v57 = vperm.slane %v1336_v5, %v3447_v60 }
 0x292   : > { %v1303_v22 = vrot.slane %v1292_v62, 4  ;;  %1731 = vmatpush.bf16.msrb.mxu0 %v1723_v11  ;;  %v3876_v53 = vperm.slane %v1348_v41, %v3447_v60  ;;  %v1361_v44 = vrot.slane %v3846_v1, 4  ;;  %v1305_v12 = vrot.slane %v1274_v50, 4 }
 0x293   : > { %v1217_v54 = vrot.slane %v3779_v47, 4  ;;  %v1379_v61 = vrot.slane %v3873_v57, 4  ;;  %v1230_v37 = vsel %vm891_vm12, %v3680_v63, %v1229_v43  ;;  %v1242_v4 = vsel %vm891_vm12, %v3672_v10, %v1241_v18 }
 0x294   : > { %v1304_v20 = vsel %vm891_vm12, %v1303_v22, %v1274_v50  ;;  %v1362_v27 = vsel %vm891_vm12, %v3870_v48, %v1361_v44  ;;  %v1306_v23 = vsel %vm891_vm12, %v1292_v62, %v1305_v12  ;;  %v1238_v18 = vperm.slane %v1230_v37, %v3447_v60 }
 0x295   : > { %v1509_v36 = vpack.c.bf16 %v1304_v20, %v1304_v20  ;;  %v1218_v47 = vsel %vm891_vm12, %v3669_v0, %v1217_v54  ;;  %v1370_v52 = vperm.slane %v1362_v27, %v3487_v38  ;;  %v1380_v9 = vsel %vm891_vm12, %v3876_v53, %v1379_v61 }
 0x296   : > { %v1512_v63 = vpack.c.bf16 %v1306_v23, %v1306_v23  ;;  %v1226_v28 = vperm.slane %v1218_v47, %v3447_v60  ;;  %v1388_v43 = vperm.slane %v1380_v9, %v3487_v38  ;;  %v1250_v19 = vperm.slane %v1242_v4, %v3447_v60 }
 0x297   : > { %v1532_v10 = vunpack.c.l.b16 %v1509_v36  ;;  %v1401_v24 = vrot.slane %v1370_v52, 4  ;;  %v1254_v0 = vsel %vm891_vm12, %v3688_v29, %v1253_v32  ;;  %v1313_v31 = vrot.slane %v3795_v21, 4 }
 0x298   : > { %v1579_v34 = vunpack.c.l.b16 %v1512_v63  ;;  %v1399_v56 = vrot.slane %v1388_v43, 4  ;;  %v1262_v49 = vperm.slane %v1254_v0, %v3447_v60  ;;  %v1275_v17 = vrot.slane %v1238_v18, 4 }
 0x299   : > { %v1326_v14 = vsel %vm891_vm12, %v3703_v51, %v1325_v58  ;;  %v1402_v13 = vsel %vm891_vm12, %v1388_v43, %v1401_v24  ;;  %v1314_v35 = vsel %vm891_vm12, %v3698_v40, %v1313_v31  ;;  %v1338_v29 = vsel %vm891_vm12, %v3708_v8, %v1337_v42 }
 0x29a   : > { %v1334_v16 = vperm.slane %v1326_v14, %v3447_v60  ;;  %v1400_v21 = vsel %vm891_vm12, %v1399_v56, %v1370_v52  ;;  %v1513_v32 = vpack.c.bf16 %v1402_v13, %v1402_v13  ;;  %v1276_v2 = vsel %vm891_vm12, %v1275_v17, %v1226_v28 }
 0x29b   : > { %v1293_v50 = vrot.slane %v1262_v49, 4  ;;  %v1510_v62 = vpack.c.bf16 %v1400_v21, %v1400_v21  ;;  %v1280_v51 = vperm.slane %v1276_v2, %v3487_v38  ;;  %v1322_v58 = vperm.slane %v1314_v35, %v3447_v60 }
 0x29c   : > { %v1346_v40 = vperm.slane %v1338_v29, %v3447_v60  ;;  %v1580_v3 = vunpack.c.l.b16 %v1513_v32  ;;  %v1350_v39 = vsel %vm891_vm12, %v3726_v55, %v1349_v45  ;;  %v1371_v8 = vrot.slane %v1334_v16, 4 }
 0x29d   : > { %v1294_v5 = vsel %vm891_vm12, %v1293_v50, %v1250_v19  ;;  %v1533_v42 = vunpack.c.l.b16 %v1510_v62  ;;  %v1358_v11 = vperm.slane %v1350_v39, %v3447_v60  ;;  %v1309_v22 = vrot.slane %v1280_v51, 4 }
 0x29e   : > { %v1298_v41 = vperm.slane %v1294_v5, %v3487_v38  ;;  %v1582_v44 = vpack.c.b16 %v1580_v3, %v1579_v34  ;;  %v1372_v12 = vsel %vm891_vm12, %v1371_v8, %v1322_v58  ;;  %v1263_v54 = vrot.slane %v3823_v46, 4 }
 0x29f   : > { %v1281_v20 = vrot.slane %v3836_v33, 4  ;;  %v1535_v61 = vpack.c.b16 %v1533_v42, %v1532_v10  ;;  %v1376_v4 = vperm.slane %v1372_v12, %v3487_v38  ;;  %v1389_v27 = vrot.slane %v1358_v11, 4 }
 0x2a0   : > { %v1307_v37 = vrot.slane %v1298_v41, 4  ;;  %v1591_v55 = vsel %vm1537_vm13, %v1582_v44, 0  ;;  %v1310_v45 = vsel %vm891_vm12, %v1298_v41, %v1309_v22  ;;  %v1264_v36 = vsel %vm891_vm12, %v1263_v54, %v3812_v25 }
 0x2a1   : > { %v1282_v23 = vsel %vm891_vm12, %v1281_v20, %v3827_v26  ;;  %v1545_v47 = vsel %vm1537_vm13, %v1535_v61, 0  ;;  %1603 = vmatpush.bf16.xpose.msrb.mxu3 %v1591_v55  ;;  %v1390_v33 = vsel %vm891_vm12, %v1389_v27, %v1346_v40  ;;  %v1405_v52 = vrot.slane %v1376_v4, 4 }
 0x2a2   : > { %v1308_v46 = vsel %vm891_vm12, %v1307_v37, %v1280_v51  ;;  %1557 = vmatpush.bf16.xpose.msra.mxu2 %v1545_v47  ;;  %v1394_v9 = vperm.slane %v1390_v33, %v3487_v38  ;;  %v1518_v28 = vpack.c.bf16 %v1310_v45, %v1310_v45  ;;  %v1270_v43 = vperm.slane %v1264_v36, %v3487_v38 }
 0x2a3   : > { %v1515_v63 = vpack.c.bf16 %v1308_v46, %v1308_v46  ;;  %v1473_v25 = vrot.slane %v3758_v59, 4  ;;  %v1288_v10 = vperm.slane %v1282_v23, %v3487_v38  ;;  %v1359_v26 = vrot.slane %v3870_v48, 4 }
 0x2a4   : > { %v1377_v18 = vrot.slane %v3876_v53, 4  ;;  %v1403_v19 = vrot.slane %v1394_v9, 4  ;;  %v1406_v24 = vsel %vm891_vm12, %v1394_v9, %v1405_v52  ;;  %v1754_v34 = vunpack.c.l.b16 %v1518_v28 }
 0x2a5   : > { %v1455_v0 = vrot.slane %v3737_v6, 4  ;;  %v1519_v31 = vpack.c.bf16 %v1406_v24, %v1406_v24  ;;  %v1299_v56 = vrot.slane %v1288_v10, 4  ;;  %v1301_v49 = vrot.slane %v1270_v43, 4 }
 0x2a6   : > { %v1360_v17 = vsel %vm891_vm12, %v1359_v26, %v3846_v1  ;;  %v1404_v59 = vsel %vm891_vm12, %v1403_v19, %v1376_v4  ;;  %v1709_v14 = vunpack.c.l.b16 %v1515_v63  ;;  %v1378_v48 = vsel %vm891_vm12, %v1377_v18, %v3873_v57 }
 0x2a7   : > { %v1366_v13 = vperm.slane %v1360_v17, %v3487_v38  ;;  %v1516_v53 = vpack.c.bf16 %v1404_v59, %v1404_v59  ;;  %v1755_v35 = vunpack.c.l.b16 %v1519_v31  ;;  %v1300_v16 = vsel %vm891_vm12, %v1299_v56, %v1270_v43 }
 0x2a8   : > { %v1384_v6 = vperm.slane %v1378_v48, %v3487_v38  ;;  %v1503_v21 = vpack.c.bf16 %v1300_v16, %v1300_v16  ;;  %v1302_v32 = vsel %vm891_vm12, %v1288_v10, %v1301_v49  ;;  %v1456_v1 = vsel %vm891_vm12, %v1455_v0, %v3729_v30 }
 0x2a9   : > { %v1397_v29 = vrot.slane %v1366_v13, 4  ;;  %v1710_v2 = vunpack.c.l.b16 %v1516_v53  ;;  %v1757_v50 = vpack.c.b16 %v1755_v35, %v1754_v34  ;;  %v1506_v51 = vpack.c.bf16 %v1302_v32, %v1302_v32 }
 0x2aa   : > { %v1395_v62 = vrot.slane %v1384_v6, 4  ;;  %v1474_v57 = vsel %vm891_vm12, %v1473_v25, %v3747_v7  ;;  %v1524_v42 = vunpack.c.l.b16 %v1503_v21  ;;  %v1462_v41 = vperm.slane %v1456_v1, %v3487_v38 }
 0x2ab   : > { %v1398_v58 = vsel %vm891_vm12, %v1384_v6, %v1397_v29  ;;  %v1712_v40 = vpack.c.b16 %v1710_v2, %v1709_v14  ;;  %1776 = vmatpush.bf16.msrb.mxu1 %v1757_v50  ;;  %v1571_v39 = vunpack.c.l.b16 %v1506_v51  ;;  %v1480_v11 = vperm.slane %v1474_v57, %v3487_v38 }
 0x2ac   : > { %v1396_v3 = vsel %vm891_vm12, %v1395_v62, %v1366_v13  ;;  %v1507_v5 = vpack.c.bf16 %v1398_v58, %v1398_v58  ;;  %v1493_v54 = vrot.slane %v1462_v41, 4  ;;  %v1614_v23 = vlaneseq }
 0x2ad   : > { %v1504_v8 = vpack.c.bf16 %v1396_v3, %v1396_v3  ;;  %1732 = vmatpush.bf16.msrb.mxu0 %v1712_v40  ;;  %v1491_v7 = vrot.slane %v1480_v11, 4 }
 0x2ae   : > { %v1572_v30 = vunpack.c.l.b16 %v1507_v5  ;;  %v1494_v20 = vsel %vm891_vm12, %v1480_v11, %v1493_v54  ;;  %v1615_v47 = vand.u32 127, %v1614_v23 }
 0x2af   : > { %v1525_v22 = vunpack.c.l.b16 %v1504_v8  ;;  %v1492_v61 = vsel %vm891_vm12, %v1491_v7, %v1462_v41  ;;  %v1508_v37 = vpack.c.bf16 %v1494_v20, %v1494_v20 }
 0x2b0   : > { %v1574_v44 = vpack.c.b16 %v1572_v30, %v1571_v39  ;;  %v1505_v4 = vpack.c.bf16 %v1492_v61, %v1492_v61  ;;  %vm1616_vm15 = vcmp.lt.s32.totalorder %v1615_v47, 17 }
 0x2b1   : > { %v1527_v12 = vpack.c.b16 %v1525_v22, %v1524_v42  ;;  %v1573_v27 = vunpack.c.l.b16 %v1508_v37 }
 0x2b2   : > { %2836 = vmatmul.msk.bf16.vlgmr.msrb.gmra.mxu3 %vm1537_vm13, %v1574_v44  ;;  %v1526_v55 = vunpack.c.l.b16 %v1505_v4 }
 0x2b3   : > { %2834 = vmatmul.msk.bf16.vlgmr.msra.gmra.mxu2 %vm1537_vm13, %v1527_v12  ;;  %v1575_v45 = vpack.c.b16 %v1573_v27, %v1573_v27 }
 0x2b4   : > { %v1528_v36 = vpack.c.b16 %v1526_v55, %v1526_v55 }
 0x2c2   : > { %2837 = vmatmul.msk.bf16.gmra.mxu3 %vm1537_vm13, %v1575_v45 }
 0x2c3   : > { %2835 = vmatmul.msk.bf16.gmra.mxu2 %vm1537_vm13, %v1528_v36 }
 0x335   : > { %v1605_v46 = vpop.f32.mrf.mxu3 }
 0x336   : > { %v1559_v33 = vpop.f32.mrf.mxu2  ;;  %v1622_v52 = vsel %vm1616_vm15, %v1605_v46, -1e+30 }
 0x337   : > { %v1619_v9 = vsel %vm1616_vm15, %v1559_v33, -1e+30  ;;  %v1635_v63 = vsel %vm1625_vm0, %v1622_v52, -inf }
 0x338   : > { %v1626_v28 = vsel %vm1625_vm0, %v1619_v9, -inf  ;;  %1636 = vmax.xlane.f32.xlu0 %v1635_v63 }
 0x339   : > { %1627 = vmax.xlane.f32.xlu2 %v1626_v28 }
 0x33d   : > { %v1607_v43 = vpop.f32.mrf.mxu3 }
 0x33e   : > { %v1561_v25 = vpop.f32.mrf.mxu2  ;;  %v1623_v10 = vsel %vm1616_vm15, %v1607_v43, -1e+30 }
 0x33f   : > { %v1620_v26 = vsel %vm1616_vm15, %v1561_v25, -1e+30  ;;  %v1638_v18 = vsel %vm1625_vm0, %v1623_v10, -inf }
 0x340   : > { %v1629_v19 = vsel %vm1625_vm0, %v1620_v26, -inf }
 0x341   : > { %1630 = vmax.xlane.f32.xlu1 %v1629_v19  ;;  %1639 = vmax.xlane.f32.xlu2 %v1638_v18 }
 0x345   : > { %v1610_v24 = vpop.f32.mrf.mxu3 }
 0x346   : > { %v1564_v34 = vpop.f32.mrf.mxu2  ;;  %v1624_v0 = vsel %vm1616_vm15, %v1610_v24, -1e+30 }
 0x347   : > { %v1621_v31 = vsel %vm1616_vm15, %v1564_v34, -1e+30  ;;  %v1641_v56 = vsel %vm1625_vm0, %v1624_v0, -inf }
 0x348   : > { %v1632_v49 = vsel %vm1625_vm0, %v1621_v31, -inf  ;;  %1642 = vmax.xlane.f32.xlu0 %v1641_v56 }
 0x349   : > { %1633 = vmax.xlane.f32.xlu1 %v1632_v49 }
 0x34d   : > { %v1612_v17 = vpop.f32.mrf.mxu3 }
 0x34e   : > { %v1566_v59 = vpop.f32.mrf.mxu2 }
 0x3ab   : > { %v1637_v14 = vpop.xlane.xlu0 %1636 }
 0x3ac   : > { %v1628_v13 = vpop.xlane.xlu2 %1627  ;;  %v1647_v48 = vsub.f32 %v1622_v52, %v1637_v14 }
 0x3ad   : > { %v1644_v53 = vsub.f32 %v1619_v9, %v1628_v13 }
 0x3ae   : > { %v1656_v35 = vmul.f32 1.442695, %v1647_v48 }
 0x3af   : > { %v1650_v16 = vmul.f32 1.442695, %v1644_v53 }
 0x3b0   : > { %3102 = vpow2.f32 %v1656_v35 }
 0x3b1   : > { %3104 = vpow2.f32 %v1650_v16 }
 0x3b4   : > { %v1631_v6 = vpop.xlane.xlu1 %1630  ;;  %v1640_v29 = vpop.xlane.xlu2 %1639 }
 0x3b5   : > { %v1645_v21 = vsub.f32 %v1620_v26, %v1631_v6  ;;  %v1648_v32 = vsub.f32 %v1623_v10, %v1640_v29 }
 0x3b6   : > { %v3103_v1 = vpop.eup %3102 }
 0x3b7   : > { %v3105_v2 = vpop.eup %3104  ;;  %v1652_v50 = vmul.f32 1.442695, %v1645_v21  ;;  %v1658_v62 = vmul.f32 1.442695, %v1648_v32  ;;  %v1671_v51 = vsel %vm1625_vm0, %v3103_v1, 0.0 }
 0x3b8   : > { %v1662_v58 = vsel %vm1625_vm0, %v3105_v2, 0.0  ;;  %1672 = vadd.xlane.f32.xlu0 %v1671_v51 }
 0x3b9   : > { %3106 = vpow2.f32 %v1652_v50  ;;  %1663 = vadd.xlane.f32.xlu2 %v1662_v58 }
 0x3ba   : > { %3108 = vpow2.f32 %v1658_v62 }
 0x3bb   : > { %v1643_v57 = vpop.xlane.xlu0 %1642 }
 0x3bc   : > { %v1634_v40 = vpop.xlane.xlu1 %1633  ;;  %v1649_v3 = vsub.f32 %v1624_v0, %v1643_v57 }
 0x3bd   : > { %v1646_v5 = vsub.f32 %v1621_v31, %v1634_v40 }
 0x3be   : > { %v1660_v39 = vmul.f32 1.442695, %v1649_v3 }
 0x3bf   : > { %v3107_v8 = vpop.eup %3106  ;;  %v1654_v42 = vmul.f32 1.442695, %v1646_v5 }
 0x3c0   : > { %v3109_v41 = vpop.eup %3108  ;;  %3110 = vpow2.f32 %v1660_v39  ;;  %v1665_v30 = vsel %vm1625_vm0, %v3107_v8, 0.0 }
 0x3c1   : > { %3112 = vpow2.f32 %v1654_v42  ;;  %1666 = vadd.xlane.f32.xlu1 %v1665_v30  ;;  %v1674_v11 = vsel %vm1625_vm0, %v3109_v41, 0.0 }
 0x3c2   : > { %1675 = vadd.xlane.f32.xlu2 %v1674_v11 }
 0x3c6   : > { %v3111_v22 = vpop.eup %3110 }
 0x3c7   : > { %v3113_v44 = vpop.eup %3112  ;;  %v1677_v12 = vsel %vm1625_vm0, %v3111_v22, 0.0 }
 0x3c8   : > { %v1668_v54 = vsel %vm1625_vm0, %v3113_v44, 0.0  ;;  %1678 = vadd.xlane.f32.xlu0 %v1677_v12 }
 0x3c9   : > { %1669 = vadd.xlane.f32.xlu1 %v1668_v54 }
 0x42b   : > { %v1673_v20 = vpop.xlane.xlu0 %1672 }
 0x42c   : > { %v1664_v7 = vpop.xlane.xlu2 %1663 }
 0x42d   : > { %3114 = vrcp.f32 %v1664_v7 }
 0x42e   : > { %3116 = vrcp.f32 %v1673_v20 }
 0x433   : > { %v3115_v37 = vpop.eup %3114 }
 0x434   : > { %v1667_v61 = vpop.xlane.xlu1 %1666  ;;  %v3117_v27 = vpop.eup %3116  ;;  %v1686_v55 = vmul.f32 %v3115_v37, %v3105_v2 }
 0x435   : > { %3118 = vrcp.f32 %v1667_v61  ;;  %v1676_v4 = vpop.xlane.xlu2 %1675  ;;  %v1689_v45 = vmul.f32 %v3117_v27, %v3103_v1 }
 0x436   : > { %3120 = vrcp.f32 %v1676_v4  ;;  %v1692_v33 = vpack.c.bf16 %v1686_v55, %v1686_v55 }
 0x437   : > { %v1695_v63 = vpack.c.bf16 %v1689_v45, %v1689_v45 }
 0x438   : > { %v1701_v10 = vunpack.c.l.b16 %v1692_v33 }
 0x439   : > { %v1746_v18 = vunpack.c.l.b16 %v1695_v63  ;;  %v2980_v63 = vld [vmem:[%s3337_s24 + $0x18] sm:$0xff] }
 0x43a   : > { %2120 = vmatpush.bf16.msrb.mxu2 %v2980_v63 }
 0x43b   : > { %v3119_v36 = vpop.eup %3118  ;;  %v1679_v47 = vpop.xlane.xlu0 %1678 }
 0x43c   : > { %v3121_v46 = vpop.eup %3120  ;;  %v1687_v52 = vmul.f32 %v3119_v36, %v3107_v8  ;;  %v1670_v9 = vpop.xlane.xlu1 %1669 }
 0x43d   : > { %v1690_v28 = vmul.f32 %v3121_v46, %v3109_v41  ;;  %3122 = vrcp.f32 %v1670_v9 }
 0x43e   : > { %v1693_v43 = vpack.c.bf16 %v1687_v52, %v1687_v52  ;;  %3124 = vrcp.f32 %v1679_v47 }
 0x43f   : > { %v1696_v25 = vpack.c.bf16 %v1690_v28, %v1690_v28 }
 0x440   : > { %v1702_v26 = vunpack.c.l.b16 %v1693_v43 }
 0x441   : > { %v1747_v19 = vunpack.c.l.b16 %v1696_v25 }
 0x442   : > { %v1704_v24 = vpack.c.b16 %v1702_v26, %v1701_v10 }
 0x443   : > { %v3123_v34 = vpop.eup %3122  ;;  %v1749_v0 = vpack.c.b16 %v1747_v19, %v1746_v18  ;;  %v2979_v18 = vld [vmem:[%s3337_s24 + $0x10] sm:$0xff] }
 0x444   : > { %v3125_v31 = vpop.eup %3124  ;;  %2838 = vmatmul.msk.bf16.vlgmr.msrb.gmra.mxu0 %vm1625_vm0, %v1704_v24  ;;  %v1688_v56 = vmul.f32 %v3123_v34, %v3113_v44  ;;  %2121 = vmatpush.bf16.msrb.mxu2 %v2979_v18 }
 0x445   : > { %2840 = vmatmul.msk.bf16.vlgmr.msrb.gmra.mxu1 %vm1625_vm0, %v1749_v0  ;;  %v1691_v49 = vmul.f32 %v3125_v31, %v3111_v22 }
 0x446   : > { %v1694_v17 = vpack.c.bf16 %v1688_v56, %v1688_v56 }
 0x447   : > { %v1697_v59 = vpack.c.bf16 %v1691_v49, %v1691_v49 }
 0x448   : > { %v1703_v14 = vunpack.c.l.b16 %v1694_v17 }
 0x449   : > { %v1748_v13 = vunpack.c.l.b16 %v1697_v59 }
 0x44a   : > { %v1705_v48 = vpack.c.b16 %v1703_v14, %v1703_v14 }
 0x44b   : > { %v1750_v53 = vpack.c.b16 %v1748_v13, %v1748_v13 }
 0x454   : > { %2839 = vmatmul.msk.bf16.gmra.mxu0 %vm1625_vm0, %v1705_v48 }
 0x455   : > { %2841 = vmatmul.msk.bf16.gmra.mxu1 %vm1625_vm0, %v1750_v53 }
 0x4c1   : > { %v1734_v35 = vpop.f32.mrf.mxu0 }
 0x4c2   : > { %v1787_v16 = vrot.slane %v1734_v35, 4  ;;  %v1792_v6 = vperm.slane %v1734_v35, %v3447_v60  ;;  %v1778_v29 = vpop.f32.mrf.mxu1 }
 0x4c3   : > { %v1797_v21 = vrot.slane %v1778_v29, 4  ;;  %v1802_v32 = vperm.slane %v1778_v29, %v3447_v60 }
 0x4c4   : > { %v1788_v1 = vsel %vm891_vm12, 0.0, %v1787_v16  ;;  %v1809_v2 = vrot.slane %v1792_v6, 4 }
 0x4c5   : > { %v1796_v50 = vperm.slane %v1788_v1, %v3447_v60  ;;  %v1798_v62 = vsel %vm891_vm12, 0.0, %v1797_v21  ;;  %v1807_v51 = vrot.slane %v1802_v32, 4 }
 0x4c6   : > { %v1806_v58 = vperm.slane %v1798_v62, %v3447_v60  ;;  %v1810_v57 = vsel %vm891_vm12, %v1802_v32, %v1809_v2  ;;  %v2978_v32 = vld [vmem:[%s3337_s24 + $0x8] sm:$0xff] }
 0x4c7   : > { %v1821_v40 = vrot.slane %v1796_v50, 4  ;;  %v1808_v3 = vsel %vm891_vm12, %v1807_v51, %v1792_v6  ;;  %v1818_v5 = vperm.slane %v1810_v57, %v3487_v38  ;;  %2122 = vmatpush.bf16.msrb.mxu2 %v2978_v32 }
 0x4c8   : > { %v1814_v39 = vperm.slane %v1808_v3, %v3487_v38  ;;  %v1819_v8 = vrot.slane %v1806_v58, 4 }
 0x4c9   : > { %v1822_v42 = vsel %vm891_vm12, %v1806_v58, %v1821_v40  ;;  %v1833_v41 = vrot.slane %v1818_v5, 4  ;;  %v1736_v30 = vpop.f32.mrf.mxu0 }
 0x4ca   : > { %v1820_v11 = vsel %vm891_vm12, %v1819_v8, %v1796_v50  ;;  %v1830_v22 = vperm.slane %v1822_v42, %v3487_v38  ;;  %v1831_v44 = vrot.slane %v1814_v39, 4  ;;  %v1839_v12 = vrot.slane %v1736_v30, 4  ;;  %v1780_v54 = vpop.f32.mrf.mxu1 }
 0x4cb   : > { %v1826_v7 = vperm.slane %v1820_v11, %v3487_v38  ;;  %v1834_v20 = vsel %vm891_vm12, 0.0, %v1833_v41  ;;  %v1844_v61 = vperm.slane %v1736_v30, %v3447_v60  ;;  %v4009_v45 = vsel %vm891_vm12, %v1833_v41, %v1814_v39 }
 0x4cc   : > { %v1832_v37 = vsel %vm891_vm12, 0.0, %v1831_v44  ;;  %v1837_v4 = vrot.slane %v1830_v22, 4  ;;  %v1948_v27 = vrot.slane %v1834_v20, 4  ;;  %v1840_v36 = vsel %vm891_vm12, 0.0, %v1839_v12  ;;  %v2977_v22 = vld [vmem:[%s3337_s24] sm:$0xff] }
 0x4cd   : > { %v1835_v55 = vrot.slane %v1826_v7, 4  ;;  %v1849_v47 = vrot.slane %v1780_v54, 4  ;;  %v1848_v52 = vperm.slane %v1840_v36, %v3447_v60  ;;  %v1861_v9 = vrot.slane %v1844_v61, 4  ;;  %2123 = vmatpush.bf16.msrb.mxu2 %v2977_v22 }
 0x4ce   : > { %v1838_v46 = vsel %vm891_vm12, 0.0, %v1837_v4  ;;  %v1949_v33 = vsel %vm891_vm12, %v1948_v27, %v1832_v37  ;;  %v1947_v43 = vperm.slane %v4009_v45, %v3447_v60  ;;  %v1854_v10 = vperm.slane %v1780_v54, %v3447_v60 }
 0x4cf   : > { %v1850_v28 = vsel %vm891_vm12, 0.0, %v1849_v47  ;;  %v1873_v25 = vrot.slane %v1848_v52, 4  ;;  %v1836_v19 = vsel %vm891_vm12, 0.0, %v1835_v55  ;;  %v1953_v24 = vperm.slane %v1949_v33, %v3447_v60 }
 0x4d0   : > { %v1858_v26 = vperm.slane %v1850_v28, %v3447_v60  ;;  %v4025_v34 = vsel %vm891_vm12, %v1837_v4, %v1826_v7  ;;  %v1959_v0 = vrot.slane %v1838_v46, 4  ;;  %v1859_v56 = vrot.slane %v1854_v10, 4 }
 0x4d1   : > { %v1739_v31 = vpop.f32.mrf.mxu0  ;;  %v1862_v49 = vsel %vm891_vm12, %v1854_v10, %v1861_v9  ;;  %v1958_v40 = vperm.slane %v4025_v34, %v3447_v60  ;;  %v1965_v3 = vrot.slane %v1953_v24, 4 }
 0x4d2   : > { %v1871_v17 = vrot.slane %v1858_v26, 4  ;;  %v1874_v59 = vsel %vm891_vm12, %v1858_v26, %v1873_v25  ;;  %v1783_v14 = vpop.f32.mrf.mxu1  ;;  %v1870_v13 = vperm.slane %v1862_v49, %v3487_v38  ;;  %v1891_v53 = vrot.slane %v1739_v31, 4 }
 0x4d3   : > { %v1882_v48 = vperm.slane %v1874_v59, %v3487_v38  ;;  %v1896_v35 = vperm.slane %v1739_v31, %v3447_v60  ;;  %v1860_v16 = vsel %vm891_vm12, %v1859_v56, %v1844_v61  ;;  %v1901_v29 = vrot.slane %v1783_v14, 4 }
 0x4d4   : > { %v1872_v6 = vsel %vm891_vm12, %v1871_v17, %v1848_v52  ;;  %v1906_v21 = vperm.slane %v1783_v14, %v3447_v60  ;;  %v1866_v1 = vperm.slane %v1860_v16, %v3487_v38  ;;  %v1885_v50 = vrot.slane %v1870_v13, 4 }
 0x4d5   : > { %v1878_v2 = vperm.slane %v1872_v6, %v3487_v38  ;;  %v1889_v62 = vrot.slane %v1882_v48, 4  ;;  %v1892_v51 = vsel %vm891_vm12, 0.0, %v1891_v53  ;;  %v1913_v58 = vrot.slane %v1896_v35, 4 }
 0x4d6   : > { %v1911_v57 = vrot.slane %v1906_v21, 4  ;;  %v1883_v5 = vrot.slane %v1866_v1, 4  ;;  %v1886_v39 = vsel %vm891_vm12, 0.0, %v1885_v50  ;;  %v1902_v8 = vsel %vm891_vm12, 0.0, %v1901_v29 }
 0x4d7   : > { %v1887_v42 = vrot.slane %v1878_v2, 4  ;;  %v1890_v41 = vsel %vm891_vm12, 0.0, %v1889_v62  ;;  %v1986_v30 = vrot.slane %v1886_v39, 4  ;;  %v1960_v11 = vsel %vm891_vm12, %v1959_v0, %v1836_v19 }
 0x4d8   : > { %v1884_v44 = vsel %vm891_vm12, 0.0, %v1883_v5  ;;  %v1981_v12 = vsel %vm891_vm12, %v1885_v50, %v1866_v1  ;;  %v1992_v54 = vsel %vm891_vm12, %v1889_v62, %v1878_v2  ;;  %v1900_v7 = vperm.slane %v1892_v51, %v3447_v60 }
 0x4d9   : > { %v1741_v20 = vpop.f32.mrf.mxu0  ;;  %v1987_v61 = vsel %vm891_vm12, %v1986_v30, %v1884_v44  ;;  %v1910_v37 = vperm.slane %v1902_v8, %v3447_v60  ;;  %v1912_v4 = vsel %vm891_vm12, %v1911_v57, %v1896_v35  ;;  %v1914_v27 = vsel %vm891_vm12, %v1906_v21, %v1913_v58 }
 0x4da   : > { %v1785_v55 = vpop.f32.mrf.mxu1  ;;  %v1991_v36 = vperm.slane %v1987_v61, %v3447_v60  ;;  %v1925_v47 = vrot.slane %v1900_v7, 4  ;;  %v1918_v46 = vperm.slane %v1912_v4, %v3487_v38  ;;  %v1922_v33 = vperm.slane %v1914_v27, %v3487_v38 }
 0x4db   : > { %v1888_v52 = vsel %vm891_vm12, 0.0, %v1887_v42  ;;  %v1997_v9 = vrot.slane %v1890_v41, 4  ;;  %v1923_v63 = vrot.slane %v1910_v37, 4  ;;  %v1964_v28 = vperm.slane %v1960_v11, %v3447_v60 }
 0x4dc   : > { %v1926_v25 = vsel %vm891_vm12, %v1910_v37, %v1925_v47  ;;  %v1935_v10 = vrot.slane %v1918_v46, 4  ;;  %v1937_v26 = vrot.slane %v1922_v33, 4  ;;  %v1966_v18 = vsel %vm891_vm12, %v1965_v3, %v1947_v43 }
 0x4dd   : > { %v2003_v19 = vrot.slane %v1991_v36, 4  ;;  %v1924_v24 = vsel %vm891_vm12, %v1923_v63, %v1900_v7  ;;  %v1934_v34 = vperm.slane %v1926_v25, %v3487_v38  ;;  %v1971_v0 = vrot.slane %v1964_v28, 4 }
 0x4de   : > { %v1985_v31 = vperm.slane %v1981_v12, %v3447_v60  ;;  %v1930_v56 = vperm.slane %v1924_v24, %v3487_v38  ;;  %v1936_v49 = vsel %vm891_vm12, 0.0, %v1935_v10  ;;  %v1938_v17 = vsel %vm891_vm12, 0.0, %v1937_v26 }
 0x4df   : > { %v1941_v59 = vrot.slane %v1934_v34, 4  ;;  %v2024_v14 = vrot.slane %v1938_v17, 4  ;;  %v1970_v45 = vperm.slane %v1966_v18, %v3487_v38  ;;  %v1972_v43 = vsel %vm891_vm12, %v1971_v0, %v1958_v40  ;;  %v3090_v18 = vld [vmem:[%s4282_s22] ss:$0 sm:$0xff]  ;;  %v3145_v17 = vld [vmem:[#allocation2 + $0x8] sm:$0xff] }
 0x4e0   : > { %v1939_v13 = vrot.slane %v1930_v56, 4  ;;  %v1976_v48 = vperm.slane %v1972_v43, %v3487_v38  ;;  %v1996_v53 = vperm.slane %v1992_v54, %v3447_v60  ;;  %v1998_v35 = vsel %vm891_vm12, %v1997_v9, %v1888_v52  ;;  %v3144_v34 = vld [vmem:[#allocation2] sm:$0xff] }
 0x4e1   : > { %v1942_v16 = vsel %vm891_vm12, 0.0, %v1941_v59  ;;  %v2025_v6 = vsel %vm891_vm12, %v2024_v14, %v1936_v49  ;;  %v2002_v29 = vperm.slane %v1998_v35, %v3447_v60  ;;  %v2004_v21 = vsel %vm891_vm12, %v2003_v19, %v1985_v31 }
 0x4e2   : > { %v2019_v32 = vsel %vm891_vm12, %v1937_v26, %v1918_v46  ;;  %v2035_v1 = vrot.slane %v1942_v16, 4  ;;  %v1977_v2 = vrot.slane %v1976_v48, 4  ;;  %v2008_v50 = vperm.slane %v2004_v21, %v3487_v38 }
 0x4e3   : > { %v1979_v62 = vrot.slane %v1970_v45, 4  ;;  %v2009_v51 = vrot.slane %v2002_v29, 4  ;;  %v1940_v58 = vsel %vm891_vm12, 0.0, %v1939_v13  ;;  %v2029_v57 = vperm.slane %v2025_v6, %v3447_v60  ;;  %v3146_v13 = vld [vmem:[#allocation2 + $0x10] sm:$0xff] }
 0x4e4   : > { %v2017_v40 = vrot.slane %v2008_v50, 4  ;;  %v2030_v3 = vsel %vm891_vm12, %v1941_v59, %v1930_v56  ;;  %v2036_v5 = vsel %vm891_vm12, %v2035_v1, %v1940_v58  ;;  %v1978_v39 = vsel %vm891_vm12, %v1977_v2, %v1970_v45 }
 0x4e5   : > { %v2023_v8 = vperm.slane %v2019_v32, %v3447_v60  ;;  %v2010_v42 = vsel %vm891_vm12, %v2009_v51, %v1996_v53  ;;  %v2040_v41 = vperm.slane %v2036_v5, %v3447_v60  ;;  %v2041_v30 = vrot.slane %v2029_v57, 4 }
 0x4e6   : > { %v2014_v11 = vperm.slane %v2010_v42, %v3487_v38  ;;  %v2034_v22 = vperm.slane %v2030_v3, %v3447_v60  ;;  %v1980_v54 = vsel %vm891_vm12, %v1976_v48, %v1979_v62  ;;  %v2987_v42 = vld [vmem:[%s3354_s26 + $0x34] sm:$0xf] }
 0x4e7   : > { %v2042_v44 = vsel %vm891_vm12, %v2041_v30, %v2023_v8  ;;  %v2047_v12 = vrot.slane %v2040_v41, 4  ;;  %v2988_v8 = vld [vmem:[%s3354_s26 + $0x34] sm:$0xf0]  ;;  %v2888_v30 = vld [vmem:[%s3354_s26 + $0x38] sm:$0xf0] }
 0x4e8   : > { %v2018_v7 = vsel %vm891_vm12, %v2014_v11, %v2017_v40  ;;  %v2015_v20 = vrot.slane %v2014_v11, 4  ;;  %v2046_v61 = vperm.slane %v2042_v44, %v3487_v38  ;;  %v2891_v11 = vor.u32 %v2987_v42, %v2888_v30 }
 0x4e9   : > { %v3083_v37 = vpack.i.bf16 %v2018_v7, %v1980_v54  ;;  %v2048_v4 = vsel %vm891_vm12, %v2047_v12, %v2034_v22  ;;  %v2878_v54 = vld [vmem:[%s3354_s26 + $0x20] sm:$0xf]  ;;  %v2986_v7 = vld [vmem:[%s3354_s26 + $0x24] sm:$0xf0] }
 0x4ea   : > { %v2052_v27 = vperm.slane %v2048_v4, %v3487_v38  ;;  %v2055_v55 = vrot.slane %v2046_v61, 4  ;;  %v2016_v36 = vsel %vm891_vm12, %v2015_v20, %v2008_v50  ;;  %2301 = vmatpush.bf16.msra.mxu0 %v2891_v11  ;;  %v2879_v20 = vor.u32 %v2986_v7, %v2878_v54  ;;  %v2870_v4 = vld [vmem:[%s3354_s26 + $0x10] sm:$0xf]  ;;  %v2996_v7 = vld [vmem:[%s3369_s0 + $0x38] sm:$0xff] }
 0x4eb   : > { %3084 = vrot.lane.b32.xlu2 %v3083_v37, %s3190_s16  ;;  %v2880_v37 = vld [vmem:[%s3354_s26 + $0x28] sm:$0xf0]  ;;  %v3003_v54 = vld [vmem:[%s3369_s0 + $0x70] sm:$0xff]  ;;  %2501 = vmatpush.bf16.msra.mxu1 %v2996_v7 }
 0x4ec   : > { %v2056_v60 = vsel %vm891_vm12, %v2052_v27, %v2055_v55  ;;  %v2053_v47 = vrot.slane %v2052_v27, 4  ;;  %v2984_v55 = vld [vmem:[%s3354_s26 + $0x14] sm:$0xf0] }
 0x4ed   : > { %2064 = vrot.lane.b32.xlu1 %v2056_v60, %s3190_s16  ;;  %v2872_v60 = vld [vmem:[%s3354_s26 + $0x18] sm:$0xf0] }
 0x4ee   : > { %v2054_v46 = vsel %vm891_vm12, %v2053_v47, %v2046_v61  ;;  %v2985_v61 = vld [vmem:[%s3354_s26 + $0x24] sm:$0xf]  ;;  %v2871_v47 = vor.u32 %v2984_v55, %v2870_v4  ;;  %v2227_v4 = vld [vmem:[%s3359_s23] sm:$0x3] }
 0x4ef   : > { %v2883_v27 = vor.u32 %v2985_v61, %v2880_v37  ;;  %v3001_v61 = vld [vmem:[%s3369_s0 + $0x60] sm:$0xff]  ;;  %v2994_v37 = vld [vmem:[%s3369_s0 + $0x28] sm:$0xff]  ;;  %v2230_v55 = vperm.slane %v2227_v4, 1 }
 0x4f1   : > { %2302 = vmatpush.bf16.msra.mxu0 %v2883_v27  ;;  %v3000_v27 = vld [vmem:[%s3369_s0 + $0x58] sm:$0xff] }
 0x545   : > { %v3085_v33 = vpop.permute.xlu2 %3084 }
 0x546   : > { %v3087_v52 = vunpack.i.h.bf16 %v3085_v33  ;;  %v3086_v9 = vunpack.i.l.bf16 %v3085_v33 }
 0x548   : > { %v2069_v63 = vsel %vm1537_vm13, %v1978_v39, %v3086_v9  ;;  %v2070_v38 = vsel %vm1537_vm13, %v2016_v36, %v3087_v52  ;;  %v2886_v39 = vld [vmem:[%s3354_s26 + $0x30] sm:$0xf]  ;;  %v2983_v36 = vld [vmem:[%s3354_s26 + $0x14] sm:$0xf] }
 0x549   : > { %v2072_v28 = vpack.c.bf16 %v2070_v38, %v2069_v63  ;;  %v2887_v41 = vor.u32 %v2988_v8, %v2886_v39 }
 0x54b   : > { %2858 = vmatmul.msk.bf16.vlgmr.msrb.gmra.mxu2 %vm664_vm1, %v2072_v28  ;;  %2283 = vmatpush.bf16.msra.mxu3 %v2887_v41 }
 0x54f   : > { %2284 = vmatpush.bf16.msra.mxu3 %v2879_v20  ;;  %v3002_v20 = vld [vmem:[%s3369_s0 + $0x68] sm:$0xff] }
 0x553   : > { %2285 = vmatpush.bf16.msra.mxu3 %v2871_v47 }
 0x55f   : > { %v2065_v25 = vpop.permute.xlu1 %2064 }
 0x560   : > { %v2071_v10 = vsel %vm1537_vm13, %v2054_v46, %v2065_v25  ;;  %v2875_v46 = vor.u32 %v2983_v36, %v2872_v60  ;;  %v2862_v25 = vld [vmem:[%s3354_s26] sm:$0xf]  ;;  %v2999_v60 = vld [vmem:[%s3369_s0 + $0x50] sm:$0xff] }
 0x561   : > { %v2073_v26 = vpack.c.bf16 %v2071_v10, %v2071_v10  ;;  %v2982_v10 = vld [vmem:[%s3354_s26 + $0x4] sm:$0xf0]  ;;  %v2993_v36 = vld [vmem:[%s3369_s0 + $0x20] sm:$0xff] }
 0x562   : > { %2303 = vmatpush.bf16.msra.mxu0 %v2875_v46 }
 0x563   : > { %2859 = vmatmul.msk.bf16.gmra.mxu2 %vm664_vm1, %v2073_v26  ;;  %v2981_v26 = vld [vmem:[%s3354_s26 + $0x4] sm:$0xf] }
 0x5ce   : > { %v2125_v19 = vpop.f32.mrf.mxu2 }
 0x5cf   : > { %v2126_v24 = vadd.f32 %v3090_v18, %v2125_v19  ;;  %v2864_v19 = vld [vmem:[%s3354_s26 + $0x8] sm:$0xf0] }
 0x5d1   : > { %v4112_v0 = vadd.f32 %v3144_v34, %v2126_v24  ;;  %v2867_v34 = vor.u32 %v2981_v26, %v2864_v19 }
 0x5d3   : > { %v2139_v31 = vsel %vm664_vm1, %v4112_v0, 0.0  ;;  %2304 = vmatpush.bf16.msra.mxu0 %v2867_v34 }
 0x5d4   : > { %2140 = vadd.xlane.f32.xlu0 %v2139_v31 }
 0x5d6   : > { %v2127_v56 = vpop.f32.mrf.mxu2 }
 0x5d7   : > { %v2128_v49 = vadd.f32 %v3090_v18, %v2127_v56 }
 0x5d9   : > { %v4116_v59 = vadd.f32 %v3145_v17, %v2128_v49 }
 0x5db   : > { %v2142_v14 = vsel %vm664_vm1, %v4116_v59, 0.0 }
 0x5dc   : > { %2143 = vadd.xlane.f32.xlu0 %v2142_v14 }
 0x5e6   : > { %v2130_v45 = vpop.f32.mrf.mxu2 }
 0x5e7   : > { %v2131_v43 = vadd.f32 %v3090_v18, %v2130_v45  ;;  %v2863_v18 = vor.u32 %v2982_v10, %v2862_v25 }
 0x5e9   : > { %v4120_v48 = vadd.f32 %v3146_v13, %v2131_v43  ;;  %2286 = vmatpush.bf16.msra.mxu3 %v2863_v18  ;;  %v2997_v18 = vld [vmem:[%s3369_s0 + $0x40] sm:$0xff] }
 0x5eb   : > { %v2145_v53 = vsel %vm664_vm1, %v4120_v48, 0.0 }
 0x5ec   : > { %2146 = vadd.xlane.f32.xlu0 %v2145_v53 }
 0x5ee   : > { %v2132_v35 = vpop.f32.mrf.mxu2 }
 0x647   : > { %v2141_v16 = vpop.xlane.xlu0 %2140 }
 0x648   : > { %v2148_v6 = vmul.f32 %v2141_v16, %v3375_v15  ;;  %v3091_v16 = vld [vmem:[%s4283_s28] ss:$0 sm:$0xff] }
 0x64a   : > { %v4126_v29 = vsub.f32 %v4112_v0, %v2148_v6 }
 0x64c   : > { %v2154_v21 = vmul.f32 %v4126_v29, %v4126_v29 }
 0x64e   : > { %v2157_v32 = vsel %vm664_vm1, %v2154_v21, 0.0 }
 0x64f   : > { %2158 = vadd.xlane.f32.xlu2 %v2157_v32  ;;  %v2144_v1 = vpop.xlane.xlu0 %2143 }
 0x650   : > { %v2149_v2 = vmul.f32 %v2144_v1, %v3375_v15 }
 0x652   : > { %v4133_v50 = vsub.f32 %v4116_v59, %v2149_v2 }
 0x654   : > { %v2155_v62 = vmul.f32 %v4133_v50, %v4133_v50 }
 0x656   : > { %v2160_v51 = vsel %vm664_vm1, %v2155_v62, 0.0 }
 0x657   : > { %2161 = vadd.xlane.f32.xlu1 %v2160_v51 }
 0x65f   : > { %v2147_v58 = vpop.xlane.xlu0 %2146 }
 0x660   : > { %v2150_v57 = vmul.f32 %v2147_v58, %v3375_v15 }
 0x662   : > { %v4140_v40 = vsub.f32 %v4120_v48, %v2150_v57 }
 0x664   : > { %v2156_v3 = vmul.f32 %v4140_v40, %v4140_v40 }
 0x666   : > { %v2163_v5 = vsel %vm664_vm1, %v2156_v3, 0.0 }
 0x667   : > { %2164 = vadd.xlane.f32.xlu0 %v2163_v5 }
 0x6c2   : > { %v2159_v22 = vpop.xlane.xlu2 %2158 }
 0x6c3   : > { %v2166_v44 = vmul.f32 %v2159_v22, %v3375_v15 }
 0x6c5   : > { %v2169_v12 = vadd.f32 1e-06, %v2166_v44 }
 0x6c7   : > { %3126 = vrsqrt.f32 %v2169_v12  ;;  %vm2178_vm3 = vweird.f32 %v2169_v12 }
 0x6ca   : > { %v2162_v33 = vpop.xlane.xlu1 %2161 }
 0x6cb   : > { %v2167_v52 = vmul.f32 %v2162_v33, %v3375_v15  ;;  %v2992_v33 = vld [vmem:[%s3369_s0 + $0x18] sm:$0xff] }
 0x6cd   : > { %v3127_v9 = vpop.eup %3126  ;;  %v2170_v63 = vadd.f32 1e-06, %v2167_v52 }
 0x6ce   : > { %v2173_v38 = vmul.f32 %v3127_v9, %v2169_v12  ;;  %vm2179_vm2 = vweird.f32 %v3127_v9  ;;  %v3004_v12 = vld [vmem:[%s3369_s0 + $0x78] sm:$0xff] }
 0x6cf   : > { %3128 = vrsqrt.f32 %v2170_v63  ;;  %vm2180_vm4 = vmor %vm2178_vm3, %vm2179_vm2  ;;  %vm2188_vm6 = vweird.f32 %v2170_v63  ;;  %2519 = vmatpush.bf16.msra.mxu2 %v3004_v12 }
 0x6d0   : > { %v2174_v28 = vmul.f32 %v3127_v9, %v2173_v38 }
 0x6d2   : > { %v2175_v24 = vmul.f32 0.5, %v2174_v28  ;;  %v2991_v28 = vld [vmem:[%s3369_s0 + $0x10] sm:$0xff] }
 0x6d3   : > { %2520 = vmatpush.bf16.msra.mxu2 %v3003_v54 }
 0x6d4   : > { %v2176_v31 = vsub.f32 1.5, %v2175_v24 }
 0x6d5   : > { %v3129_v56 = vpop.eup %3128 }
 0x6d6   : > { %v2177_v49 = vmul.f32 %v3127_v9, %v2176_v31  ;;  %v2183_v17 = vmul.f32 %v3129_v56, %v2170_v63  ;;  %vm2189_vm5 = vweird.f32 %v3129_v56  ;;  %v2998_v63 = vld [vmem:[%s3369_s0 + $0x48] sm:$0xff] }
 0x6d7   : > { %vm2190_vm7 = vmor %vm2188_vm6, %vm2189_vm5  ;;  %2521 = vmatpush.bf16.msra.mxu2 %v3002_v20 }
 0x6d8   : > { %v2184_v14 = vmul.f32 %v3129_v56, %v2183_v17  ;;  %v2181_v45 = vsel %vm2180_vm4, %v3127_v9, %v2177_v49  ;;  %v2229_v9 = vperm.slane %v2227_v4, 0 }
 0x6d9   : > { %v2202_v6 = vmul.f32 %v2181_v45, %v4126_v29 }
 0x6da   : > { %v2185_v43 = vmul.f32 0.5, %v2184_v14  ;;  %v2165_v13 = vpop.xlane.xlu0 %2164 }
 0x6db   : > { %v2168_v53 = vmul.f32 %v2165_v13, %v3375_v15  ;;  %v3092_v15 = vld [vmem:[%s626_s13] ss:$0 sm:$0xff]  ;;  %v2208_v2 = vmul.f32 %v3091_v16, %v2202_v6  ;;  %2522 = vmatpush.bf16.msra.mxu2 %v3001_v61 }
 0x6dc   : > { %v2186_v35 = vsub.f32 1.5, %v2185_v43  ;;  %v2989_v13 = vld [vmem:[%s3369_s0] sm:$0xff] }
 0x6dd   : > { %v2171_v21 = vadd.f32 1e-06, %v2168_v53  ;;  %v2214_v57 = vadd.f32 %v3092_v15, %v2208_v2 }
 0x6de   : > { %v2187_v32 = vmul.f32 %v3129_v56, %v2186_v35 }
 0x6df   : > { %3130 = vrsqrt.f32 %v2171_v21  ;;  %vm2198_vm9 = vweird.f32 %v2171_v21  ;;  %2523 = vmatpush.bf16.msra.mxu2 %v3000_v27 }
 0x6e0   : > { %v2191_v1 = vsel %vm2190_vm7, %v3129_v56, %v2187_v32  ;;  %v2990_v56 = vld [vmem:[%s3369_s0 + $0x8] sm:$0xff] }
 0x6e1   : > { %v2203_v62 = vmul.f32 %v2191_v1, %v4133_v50 }
 0x6e3   : > { %v2209_v51 = vmul.f32 %v3091_v16, %v2203_v62  ;;  %2524 = vmatpush.bf16.msra.mxu2 %v2999_v60 }
 0x6e5   : > { %v3131_v58 = vpop.eup %3130  ;;  %v2215_v3 = vadd.f32 %v3092_v15, %v2209_v51 }
 0x6e6   : > { %v2193_v5 = vmul.f32 %v3131_v58, %v2171_v21  ;;  %vm2199_vm8 = vweird.f32 %v3131_v58 }
 0x6e7   : > { %v2217_v29 = vpack.c.bf16 %v2215_v3, %v2214_v57  ;;  %vm2200_vm10 = vmor %vm2198_vm9, %vm2199_vm8  ;;  %2525 = vmatpush.bf16.msra.mxu2 %v2998_v63 }
 0x6e8   : > { %v2194_v39 = vmul.f32 %v3131_v58, %v2193_v5 }
 0x6e9   : > { %2892 = vmatmul.msk.bf16.vlgmr.msra.gmra.mxu3 %vm664_vm1, %v2217_v29  ;;  %2894 = vmatmul.msk.bf16.vlgmr.msra.gmra.mxu0 %vm664_vm1, %v2217_v29 }
 0x6ea   : > { %v2195_v8 = vmul.f32 0.5, %v2194_v39 }
 0x6eb   : > { %2526 = vmatpush.bf16.msra.mxu2 %v2997_v18 }
 0x6ec   : > { %v2196_v42 = vsub.f32 1.5, %v2195_v8 }
 0x6ee   : > { %v2197_v41 = vmul.f32 %v3131_v58, %v2196_v42 }
 0x6f0   : > { %v2201_v50 = vsel %vm2200_vm10, %v3131_v58, %v2197_v41 }
 0x6f1   : > { %v2204_v30 = vmul.f32 %v2201_v50, %v4140_v40  ;;  %v2995_v40 = vld [vmem:[%s3369_s0 + $0x30] sm:$0xff] }
 0x6f2   : > { %2502 = vmatpush.bf16.msra.mxu1 %v2995_v40 }
 0x6f3   : > { %v2210_v11 = vmul.f32 %v3091_v16, %v2204_v30 }
 0x6f5   : > { %v2216_v22 = vadd.f32 %v3092_v15, %v2210_v11 }
 0x6f6   : > { %2503 = vmatpush.bf16.msra.mxu1 %v2994_v37 }
 0x6f7   : > { %v2218_v44 = vpack.c.bf16 %v2216_v22, %v2216_v22 }
 0x6f9   : > { %2893 = vmatmul.msk.bf16.gmra.mxu3 %vm664_vm1, %v2218_v44  ;;  %2895 = vmatmul.msk.bf16.gmra.mxu0 %vm664_vm1, %v2218_v44 }
 0x6fa   : > { %2504 = vmatpush.bf16.msra.mxu1 %v2993_v36 }
 0x6fe   : > { %2505 = vmatpush.bf16.msra.mxu1 %v2992_v33 }
 0x702   : > { %2506 = vmatpush.bf16.msra.mxu1 %v2991_v28 }
 0x706   : > { %2507 = vmatpush.bf16.msra.mxu1 %v2990_v56 }
 0x70a   : > { %2508 = vmatpush.bf16.msra.mxu1 %v2989_v13  ;;  %v3093_v13 = vld [vmem:[%s643_s14] ss:$0 sm:$0xff]  ;;  %s4285_s14 = sld [smem:[#allocation9_spill]] (!%p2960_p8) }
 0x710   : > { %s4287_s5 = scalar_lea.vmem (!%p2960_p8), %s4286_s4, %s4285_s14 }
 0x766   : > { %v2306_v47 = vpop.f32.mrf.mxu0 }
 0x767   : > { %v2307_v46 = vadd.f32 %v2306_v47, %v2230_v55 }
 0x769   : > { %v2322_v52 = vmul.f32 0.044715, %v2307_v46  ;;  %v2316_v54 = vmul.f32 0.5, %v2307_v46 }
 0x76b   : > { %v2328_v38 = vmul.f32 %v2322_v52, %v2307_v46 }
 0x76c   : > { %v2288_v25 = vpop.f32.mrf.mxu3 }
 0x76d   : > { %v2334_v10 = vmul.f32 %v2328_v38, %v2307_v46  ;;  %v4195_v26 = vadd.f32 %v2288_v25, %v2229_v9 }
 0x76e   : > { %v2308_v19 = vpop.f32.mrf.mxu0 }
 0x76f   : > { %v2340_v24 = vadd.f32 %v2334_v10, %v2307_v46  ;;  %v2321_v34 = vmul.f32 0.044715, %v4195_v26  ;;  %v2309_v31 = vadd.f32 %v2308_v19, %v2230_v55 }
 0x771   : > { %v2327_v49 = vmul.f32 %v2321_v34, %v4195_v26  ;;  %v2324_v17 = vmul.f32 0.044715, %v2309_v31  ;;  %v2346_v14 = vmul.f32 0.7978846, %v2340_v24  ;;  %v2318_v7 = vmul.f32 0.5, %v2309_v31 }
 0x773   : > { %v2333_v45 = vmul.f32 %v2327_v49, %v4195_v26  ;;  %v2330_v43 = vmul.f32 %v2324_v17, %v2309_v31  ;;  %3132 = vtanh.f32 %v2346_v14 }
 0x774   : > { %v2290_v53 = vpop.f32.mrf.mxu3 }
 0x775   : > { %v2339_v35 = vadd.f32 %v2333_v45, %v4195_v26  ;;  %v2336_v16 = vmul.f32 %v2330_v43, %v2309_v31  ;;  %v2291_v6 = vadd.f32 %v2290_v53, %v2229_v9 }
 0x776   : > { %v2311_v21 = vpop.f32.mrf.mxu0 }
 0x777   : > { %v2342_v32 = vadd.f32 %v2336_v16, %v2309_v31  ;;  %v2323_v1 = vmul.f32 0.044715, %v2291_v6  ;;  %v2312_v15 = vadd.f32 %v2311_v21, %v2230_v55  ;;  %v2345_v2 = vmul.f32 0.7978846, %v2339_v35 }
 0x778   : > { %v2317_v63 = vmul.f32 0.5, %v2291_v6 }
 0x779   : > { %v2348_v62 = vmul.f32 0.7978846, %v2342_v32  ;;  %v2329_v51 = vmul.f32 %v2323_v1, %v2291_v6  ;;  %v2326_v58 = vmul.f32 0.044715, %v2312_v15  ;;  %v3133_v29 = vpop.eup %3132  ;;  %v2320_v19 = vmul.f32 0.5, %v2312_v15 }
 0x77a   : > { %v2358_v11 = vadd.f32 1.0, %v3133_v29 }
 0x77b   : > { %v2335_v57 = vmul.f32 %v2329_v51, %v2291_v6  ;;  %3134 = vtanh.f32 %v2348_v62  ;;  %v2332_v5 = vmul.f32 %v2326_v58, %v2312_v15 }
 0x77c   : > { %v2293_v3 = vpop.f32.mrf.mxu3  ;;  %3136 = vtanh.f32 %v2345_v2  ;;  %v2364_v27 = vmul.f32 %v2358_v11, %v2316_v54 }
 0x77d   : > { %v2341_v39 = vadd.f32 %v2335_v57, %v2291_v6  ;;  %v2294_v8 = vadd.f32 %v2293_v3, %v2229_v9  ;;  %v2338_v41 = vmul.f32 %v2332_v5, %v2312_v15  ;;  %v2315_v9 = vmul.f32 0.5, %v4195_v26 }
 0x77e   : > { %v2313_v42 = vpop.f32.mrf.mxu0 }
 0x77f   : > { %v2347_v50 = vmul.f32 0.7978846, %v2341_v39  ;;  %v2325_v30 = vmul.f32 0.044715, %v2294_v8  ;;  %v2344_v22 = vadd.f32 %v2338_v41, %v2312_v15  ;;  %v2319_v49 = vmul.f32 0.5, %v2294_v8 }
 0x781   : > { %v3135_v44 = vpop.eup %3134  ;;  %3138 = vtanh.f32 %v2347_v50  ;;  %v2331_v12 = vmul.f32 %v2325_v30, %v2294_v8  ;;  %v2350_v40 = vmul.f32 0.7978846, %v2344_v22 }
 0x782   : > { %v2360_v20 = vadd.f32 1.0, %v3135_v44  ;;  %v3137_v61 = vpop.eup %3136 }
 0x783   : > { %v2337_v37 = vmul.f32 %v2331_v12, %v2294_v8  ;;  %3140 = vtanh.f32 %v2350_v40  ;;  %v2357_v47 = vadd.f32 1.0, %v3137_v61 }
 0x784   : > { %v2295_v4 = vpop.f32.mrf.mxu3  ;;  %v2366_v55 = vmul.f32 %v2360_v20, %v2318_v7 }
 0x785   : > { %v2343_v36 = vadd.f32 %v2337_v37, %v2294_v8  ;;  %v2363_v46 = vmul.f32 %v2357_v47, %v2315_v9 }
 0x786   : > { %v2370_v60 = vpack.c.bf16 %v2366_v55, %v2364_v27 }
 0x787   : > { %v3139_v33 = vpop.eup %3138  ;;  %v2349_v52 = vmul.f32 0.7978846, %v2343_v36 }
 0x788   : > { %2527 = vmatmul.bf16.vlgmr.msra.gmra.mxu2 %v2370_v60  ;;  %v2359_v38 = vadd.f32 1.0, %v3139_v33 }
 0x789   : > { %v3141_v25 = vpop.eup %3140  ;;  %3142 = vtanh.f32 %v2349_v52 }
 0x78a   : > { %v2365_v28 = vmul.f32 %v2359_v38, %v2317_v63  ;;  %v2362_v18 = vadd.f32 1.0, %v3141_v25 }
 0x78c   : > { %v2369_v10 = vpack.c.bf16 %v2365_v28, %v2363_v46  ;;  %v2368_v34 = vmul.f32 %v2362_v18, %v2320_v19 }
 0x78e   : > { %2509 = vmatmul.bf16.vlgmr.msra.gmra.mxu1 %v2369_v10  ;;  %v2372_v56 = vpack.c.bf16 %v2368_v34, %v2368_v34 }
 0x78f   : > { %v3143_v24 = vpop.eup %3142 }
 0x790   : > { %v2361_v31 = vadd.f32 1.0, %v3143_v24 }
 0x792   : > { %v2367_v17 = vmul.f32 %v2361_v31, %v2319_v49 }
 0x794   : > { %v2371_v14 = vpack.c.bf16 %v2367_v17, %v2367_v17 }
 0x798   : > { %2532 = vmatmul.bf16.gmra.mxu2 %v2372_v56 }
 0x79e   : > { %2514 = vmatmul.bf16.gmra.mxu1 %v2371_v14 }
 0x80b   : > { %v2510_v26 = vpop.f32.mrf.mxu1  ;;  %v2528_v45 = vpop.f32.mrf.mxu2 }
 0x80c   : > { %v2529_v43 = vadd.f32 %v2528_v45, %v2510_v26 }
 0x80e   : > { %v2537_v53 = vadd.f32 %v2529_v43, %v4112_v0 }
 0x810   : > { %v2544_v35 = vadd.f32 %v3093_v13, %v2537_v53 }
 0x812   : > { %2547 = vst.msk [vmem:[#allocation2] sm:$0xff] %vm664_vm1, %v2544_v35 }
 0x813   : > { %v2512_v16 = vpop.f32.mrf.mxu1  ;;  %v2530_v6 = vpop.f32.mrf.mxu2 }
 0x814   : > { %v2531_v21 = vadd.f32 %v2530_v6, %v2512_v16 }
 0x816   : > { %v2538_v32 = vadd.f32 %v2531_v21, %v4116_v59 }
 0x818   : > { %v2545_v1 = vadd.f32 %v3093_v13, %v2538_v32 }
 0x81a   : > { %2548 = vst.msk [vmem:[#allocation2 + $0x8] sm:$0xff] %vm664_vm1, %v2545_v1 }
 0x81b   : > { %v2515_v15 = vpop.f32.mrf.mxu1  ;;  %v2533_v2 = vpop.f32.mrf.mxu2 }
 0x81c   : > { %v2534_v62 = vadd.f32 %v2533_v2, %v2515_v15 }
 0x81e   : > { %v2539_v51 = vadd.f32 %v2534_v62, %v4120_v48 }
 0x81f   : > { %2553 = sbr.rel (%p2960_p8) target bundleno = 2110 (0x83e), region = 80 }
 0x820   : > { %v2546_v58 = vadd.f32 %v3093_v13, %v2539_v51 }
 0x822   : > { %2549 = vst.msk [vmem:[#allocation2 + $0x10] sm:$0xff] %vm664_vm1, %v2546_v58 }
 0x823   : > { %v2517_v0 = vpop.f32.mrf.mxu1  ;;  %v2535_v57 = vpop.f32.mrf.mxu2 }
 0x824   : > { %v2555_v3 = vshrl.u32 %v1614_v23, 7  ;;  %v3195_v5 = vmov 16.0   ;;  %v3196_v29 = vmov 0.0   ;;  %v2577_v48 = vsel %vm664_vm1, %v2545_v1, 0.0 }
 0x825   : > { %3147 = vrcp.f32 %v3195_v5  ;;  %vm2595_vm14 = vcmask 516096  }
 0x826   : > { %v2557_v59 = vadd.s32 16, %v2555_v3  ;;  %vm2558_vm11 = vcmp.ge.s32.totalorder %v2555_v3, 1 }
 0x827   : > { %v2961_v39 = vsel %vm2558_vm11, 1.0, %v3196_v29 }
 0x828   : > { %vm2563_vm12 = vcmp.lt.s32.totalorder %v2557_v59, 17  ;;  %v2573_v8 = vmul.f32 %v2961_v39, %v2544_v35 }
 0x829   : > { %v2962_v42 = vsel %vm2563_vm12, 1.0, %v3196_v29 }
 0x82a   : > { %v2575_v41 = vmul.f32 %v2962_v42, %v2546_v58  ;;  %v2576_v50 = vsel %vm664_vm1, %v2573_v8, 0.0 }
 0x82b   : > { %v3148_v30 = vpop.eup %3147  ;;  %v2578_v11 = vadd.f32 %v2577_v48, %v2576_v50 }
 0x82c   : > { %v2579_v22 = vsel %vm664_vm1, %v2575_v41, 0.0  ;;  %v2588_v23 = vmul.f32 16.0, %v3148_v30  ;;  %vm2592_vm13 = vweird.f32 %v3148_v30 }
 0x82d   : > { %v2580_v44 = vadd.f32 %v2579_v22, %v2578_v11 }
 0x82e   : > { %v2589_v12 = vsub.f32 1.0, %v2588_v23 }
 0x82f   : > { %v2581_v54 = vrot.slane %v2580_v44, 4 }
 0x830   : > { %v2590_v7 = vmul.f32 %v3148_v30, %v2589_v12 }
 0x831   : > { %v2582_v20 = vadd.f32 %v2581_v54, %v2580_v44 }
 0x832   : > { %v2591_v61 = vadd.f32 %v3148_v30, %v2590_v7 }
 0x833   : > { %v2583_v40 = vrot.slane %v2582_v20, 2 }
 0x834   : > { %v2593_v27 = vsel %vm2592_vm13, %v3148_v30, %v2591_v61 }
 0x835   : > { %v2584_v37 = vadd.f32 %v2583_v40, %v2582_v20 }
 0x837   : > { %v2585_v4 = vrot.slane %v2584_v37, 1 }
 0x839   : > { %v2586_v55 = vadd.f32 %v2585_v4, %v2584_v37 }
 0x83b   : > { %v2594_v36 = vmul.f32 %v2593_v27, %v2586_v55 }
 0x83d   : > { %2596 = vst.msk [vmem:[%s4287_s5] sm:$0x1] %vm2595_vm14, %v2594_v36 }
 0x83e PF: > { %s4288_s27 = sld [smem:[#allocation6_spill]] }
 0x83f   : > { %s4289_s25 = sld [smem:[#allocation4_spill]] }
 0x840   : > { %s4290_s26 = sld [smem:[#allocation5_spill]] }
 0x841   : > { %s4292_s28 = sld [smem:[#allocation8_spill]] }
 0x844   : > { %s23_s29 = sadd.s32 1, %s4288_s27   ;;  %s4291_s27 = sld [smem:[#allocation7_spill]] }
 0x845   : > { %p20_p9 = scmp.ge.s32.totalorder %s23_s29, 6  }
 0x847   :  { %22 = sbr.rel (!%p20_p9) target bundleno = 7 (0x7), region = 146 }

</bundles_post_ra>
